<compile_context>
chip_gen: v7x
topology: tpu7x:2x2x1
jax: 0.10.0
libtpu: 0.0.40
codegen_flags: <defaults>
</compile_context>

<pallas_src>
import functools
import math

import jax
import jax.numpy as jnp
from jax import lax
from jax.experimental import pallas as pl
from jax.experimental.pallas import tpu as pltpu


_VMEM_LIMIT_BYTES = 32 * 1024 * 1024  # safe on v5e/v6e/v7x at these shapes


def _cparams(*sem):
    return pltpu.CompilerParams(
        dimension_semantics=sem, vmem_limit_bytes=_VMEM_LIMIT_BYTES
    )


def _layer_norm(x, gamma, beta, eps=1e-5):
    # f32 statistics; gamma/beta are (1, E) f32.
    mu = jnp.mean(x, axis=-1, keepdims=True)
    var = jnp.mean(jnp.square(x - mu), axis=-1, keepdims=True)
    return (x - mu) * lax.rsqrt(var + eps) * gamma + beta


# ----------------------------------------------------------------------------
# Generic M-tiled linear kernel:  out = x @ W + b   (bf16 in, f32 accumulate)
# Used for patch embedding and the classifier head.
# ----------------------------------------------------------------------------
def _linear_kernel(x_ref, w_ref, b_ref, o_ref):
    acc = jnp.dot(x_ref[...], w_ref[...], preferred_element_type=jnp.float32)
    o_ref[...] = (acc + b_ref[...]).astype(o_ref.dtype)


def linear(x, w, b, *, tm=512, out_dtype=jnp.float32):
    # x: (M, K) bf16, w: (K, N) bf16, b: (1, N) f32.
    M, K = x.shape
    N = w.shape[1]
    tm = M if M <= tm else tm  # at toy scale: one grid step, no ragged block
    grid = (pl.cdiv(M, tm),)
    return pl.pallas_call(
        _linear_kernel,
        out_shape=jax.ShapeDtypeStruct((M, N), out_dtype),
        grid=grid,
        in_specs=[
            pl.BlockSpec((tm, K), lambda i: (i, 0)),
            pl.BlockSpec((K, N), lambda i: (0, 0)),
            pl.BlockSpec((1, N), lambda i: (0, 0)),
        ],
        out_specs=pl.BlockSpec((tm, N), lambda i: (i, 0)),
        compiler_params=_cparams("parallel"),
    )(x, w, b)


# ----------------------------------------------------------------------------
# Fused encoder layer kernel (one pallas_call per layer):
#   x = x + MHSA(LN1(x));  x = x + MLP(LN2(x))
# Block: (bt, S, E) bf16 residual tokens.  All weights resident (constant
# index maps).  Per-head attention loop is unrolled at trace time; the output
# projection is accumulated per head so no head-merge transpose is needed.
# ----------------------------------------------------------------------------
def _encoder_layer_kernel(
    x_ref,
    ln1w_ref, ln1b_ref,
    wqkv_ref, bqkv_ref,
    wo_ref, bo_ref,
    ln2w_ref, ln2b_ref,
    w1_ref, b1_ref,
    w2_ref, b2_ref,
    o_ref,
    *, num_heads, seq_real,
):
    bt, S, E = x_ref.shape
    D = E // num_heads

    x = x_ref[...].astype(jnp.float32).reshape(bt * S, E)  # f32 residual

    # ---- LN1 + fused QKV projection (1/sqrt(D) already folded into Q cols).
    y = _layer_norm(x, ln1w_ref[...], ln1b_ref[...]).astype(jnp.bfloat16)
    qkv = (
        jnp.dot(y, wqkv_ref[...], preferred_element_type=jnp.float32)
        + bqkv_ref[...]
    ).astype(jnp.bfloat16)                                  # (bt*S, 3E)

    # ---- Multi-head attention with fused per-head output projection.
    if seq_real < S:
        key_mask = lax.broadcasted_iota(jnp.int32, (bt, S, S), 2) < seq_real
    else:
        key_mask = None

    attn_acc = jnp.zeros((bt * S, E), jnp.float32)
    for h in range(num_heads):
        q = qkv[:, h * D:(h + 1) * D].reshape(bt, S, D)
        k = qkv[:, E + h * D:E + (h + 1) * D].reshape(bt, S, D)
        v = qkv[:, 2 * E + h * D:2 * E + (h + 1) * D].reshape(bt, S, D)

        s = jnp.einsum("bqd,bkd->bqk", q, k,
                       preferred_element_type=jnp.float32)  # (bt, S, S)
        if key_mask is not None:
            s = jnp.where(key_mask, s, jnp.float32(-1e30))
        m = jnp.max(s, axis=-1, keepdims=True)
        p = jnp.exp(s - m)
        denom = jnp.sum(p, axis=-1, keepdims=True)
        p = (p * pl.reciprocal(denom, approx=True)).astype(jnp.bfloat16)

        o_h = jnp.einsum("bqk,bkd->bqd", p, v,
                         preferred_element_type=jnp.float32)  # (bt, S, D)
        attn_acc = attn_acc + jnp.dot(
            o_h.reshape(bt * S, D).astype(jnp.bfloat16),
            wo_ref[h * D:(h + 1) * D, :],
            preferred_element_type=jnp.float32,
        )

    x1 = x + attn_acc + bo_ref[...]                           # f32 residual

    # ---- LN2 + MLP (ReLU).  Dropout is identity (eval mode).
    # TODO(synk): nn.Dropout(p=0.1) has no deterministic Pallas equivalent;
    # treated as identity (eval-mode semantics).
    z = _layer_norm(x1, ln2w_ref[...], ln2b_ref[...]).astype(jnp.bfloat16)
    h1 = jnp.maximum(
        jnp.dot(z, w1_ref[...], preferred_element_type=jnp.float32)
        + b1_ref[...],
        0.0,
    )
    h2 = (
        jnp.dot(h1.astype(jnp.bfloat16), w2_ref[...],
                preferred_element_type=jnp.float32)
        + b2_ref[...]
    )
    o_ref[...] = (x1 + h2).reshape(bt, S, E).astype(o_ref.dtype)


def encoder_layer(x, p, *, num_heads, seq_real):
    B, S, E = x.shape
    hid = p["w1"].shape[1]
    # Two parallel grid steps when B is even (v7x megacore); single step
    # otherwise (v5e/v6e are single-TC so extra splits are pure overhead).
    bt = B // 2 if (B >= 2 and B % 2 == 0) else B

    tok = lambda b: (b, 0, 0)
    const = lambda b: (0, 0)
    kern = functools.partial(
        _encoder_layer_kernel, num_heads=num_heads, seq_real=seq_real
    )
    return pl.pallas_call(
        kern,
        out_shape=jax.ShapeDtypeStruct((B, S, E), jnp.bfloat16),
        grid=(B // bt,),
        in_specs=[
            pl.BlockSpec((bt, S, E), tok),                                 # x
            pl.BlockSpec((1, E), const), pl.BlockSpec((1, E), const),      # ln1
            pl.BlockSpec((E, 3 * E), const), pl.BlockSpec((1, 3 * E), const),  # qkv
            pl.BlockSpec((E, E), const), pl.BlockSpec((1, E), const),      # out proj
            pl.BlockSpec((1, E), const), pl.BlockSpec((1, E), const),      # ln2
            pl.BlockSpec((E, hid), const), pl.BlockSpec((1, hid), const),  # fc1
            pl.BlockSpec((hid, E), const), pl.BlockSpec((1, E), const),    # fc2
        ],
        out_specs=pl.BlockSpec((bt, S, E), tok),
        compiler_params=_cparams("parallel"),
    )(x, p["ln1w"], p["ln1b"], p["wqkv"], p["bqkv"], p["wo"], p["bo"],
      p["ln2w"], p["ln2b"], p["w1"], p["b1"], p["w2"], p["b2"])


# ----------------------------------------------------------------------------
# Patch embedding: Conv2d(kernel=stride=patch) == patchify + linear projection.
# The patchify transpose (im2col) runs in plain XLA; the matmul is Pallas.
# ----------------------------------------------------------------------------
def patch_embed(x, w, b, patch_size):
    B, C, H, W = x.shape
    P = patch_size
    nh, nw = H // P, W // P
    patches = (
        x.reshape(B, C, nh, P, nw, P)
        .transpose(0, 2, 4, 1, 3, 5)            # (B, nh, nw, C, P, P)
        .reshape(B * nh * nw, C * P * P)
        .astype(jnp.bfloat16)
    )
    out = linear(patches, w, b)                 # Pallas matmul, f32 out
    return out.reshape(B, nh * nw, -1)


# ----------------------------------------------------------------------------
# Parameter construction (deterministic, synthetic).  Matmul weights bf16,
# biases / LayerNorm params / token embeddings f32.  The 1/sqrt(head_dim)
# attention scale is folded into the Q columns of wqkv / bqkv here.
# ----------------------------------------------------------------------------
def init_params(key, *, img_size, patch_size, in_chans, embed_dim, num_heads,
                num_layers, num_classes):
    num_patches = (img_size // patch_size) ** 2
    head_dim = embed_dim // num_heads
    q_scale = 1.0 / math.sqrt(head_dim)
    keys = iter(jax.random.split(key, 16 + num_layers * 16))
    bf = jnp.bfloat16

    def w(shape, scale=0.02, dtype=jnp.float32):
        return (scale * jax.random.normal(next(keys), shape)).astype(dtype)

    params = {}
    # Conv2d(in_chans, embed_dim, P, P) -> (in_chans*P*P, embed_dim)
    params["patch_w"] = w((in_chans * patch_size * patch_size, embed_dim),
                          dtype=bf)
    params["patch_b"] = w((1, embed_dim))
    params["cls_token"] = w((1, 1, embed_dim))
    params["pos_embed"] = w((1, 1 + num_patches, embed_dim))

    layers = []
    for _ in range(num_layers):
        wqkv = w((embed_dim, 3 * embed_dim))          # pre-transposed (E, 3E)
        bqkv = w((1, 3 * embed_dim))
        # fold attention scale into Q columns (zero runtime cost)
        wqkv = wqkv.at[:, :embed_dim].multiply(q_scale)
        bqkv = bqkv.at[:, :embed_dim].multiply(q_scale)
        layers.append(dict(
            ln1w=jnp.ones((1, embed_dim), jnp.float32),
            ln1b=jnp.zeros((1, embed_dim), jnp.float32),
            wqkv=wqkv.astype(bf),
            bqkv=bqkv,
            wo=w((embed_dim, embed_dim), dtype=bf),
            bo=w((1, embed_dim)),
            ln2w=jnp.ones((1, embed_dim), jnp.float32),
            ln2b=jnp.zeros((1, embed_dim), jnp.float32),
            w1=w((embed_dim, 2 * embed_dim), dtype=bf),
            b1=w((1, 2 * embed_dim)),
            w2=w((2 * embed_dim, embed_dim), dtype=bf),
            b2=w((1, embed_dim)),
        ))
    params["layers"] = layers

    # Classifier head padded to a lane-dense 128-wide output; sliced outside.
    n_pad = ((num_classes + 127) // 128) * 128
    head_w = w((embed_dim, num_classes))
    head_b = w((1, num_classes))
    params["head_w"] = jnp.pad(
        head_w, ((0, 0), (0, n_pad - num_classes))).astype(bf)
    params["head_b"] = jnp.pad(head_b, ((0, 0), (0, n_pad - num_classes)))
    return params


# ----------------------------------------------------------------------------
# Full ViT forward pass.
# ----------------------------------------------------------------------------
def vit_forward(x, params, *, patch_size, num_heads, num_classes):
    B = x.shape[0]
    E = params["pos_embed"].shape[-1]
    seq_real = params["pos_embed"].shape[1]
    seq_pad = ((seq_real + 7) // 8) * 8          # align to (8,128) sublanes

    tokens = patch_embed(x, params["patch_w"], params["patch_b"], patch_size)
    cls = jnp.broadcast_to(params["cls_token"], (B, 1, E)).astype(tokens.dtype)
    tokens = jnp.concatenate([cls, tokens], axis=1) + params["pos_embed"]
    tokens = jnp.pad(tokens, ((0, 0), (0, seq_pad - seq_real), (0, 0)))
    tokens = tokens.astype(jnp.bfloat16)         # bf16 residual stream in HBM

    for layer_params in params["layers"]:
        tokens = encoder_layer(tokens, layer_params,
                               num_heads=num_heads, seq_real=seq_real)

    # NOTE: reference module has no final encoder LayerNorm; head(x[:, 0]).
    cls_out = tokens[:, 0]                                        # (B, E) bf16
    logits = linear(cls_out, params["head_w"], params["head_b"])  # (B, 128) f32
    return logits[:, :num_classes]


if __name__ == "__main__":
    # Small shapes consistent with the module: 24x24 image, 6x6 patches -> 16
    # patches + cls token = seq 17 (padded to 24 in-kernel); embed_dim 64,
    # 4 heads, 2 layers, 7 classes, batch 2.
    img_size, patch_size, in_chans = 24, 6, 3
    embed_dim, num_heads, num_layers, num_classes = 64, 4, 2, 7
    batch = 2

    key = jax.random.PRNGKey(0)
    k_params, k_x = jax.random.split(key)
    params = init_params(
        k_params,
        img_size=img_size, patch_size=patch_size, in_chans=in_chans,
        embed_dim=embed_dim, num_heads=num_heads, num_layers=num_layers,
        num_classes=num_classes,
    )
    x = jax.random.normal(k_x, (batch, in_chans, img_size, img_size),
                          jnp.float32)

    fwd = jax.jit(functools.partial(
        vit_forward, patch_size=patch_size, num_heads=num_heads,
        num_classes=num_classes))
    logits = fwd(x, params)
    jax.block_until_ready(logits)
    assert logits.shape == (batch, num_classes)
    assert bool(jnp.isfinite(logits).all())
    print("KERNEL_OK")
</pallas_src>

<mosaic_0001>
module attributes {stable_mosaic.version = 11 : i64} {
  func.func @_linear_kernel(%arg0: i32, %arg1: memref<32x108xbf16, #tpu.memory_space<vmem>>, %arg2: memref<108x64xbf16, #tpu.memory_space<vmem>>, %arg3: memref<1x64xf32, #tpu.memory_space<vmem>>, %arg4: memref<32x64xf32, #tpu.memory_space<vmem>>) attributes {dimension_semantics = [#tpu.dimension_semantics<parallel>], iteration_bounds = array<i64: 1>, scalar_prefetch = 0 : i64, scratch_operands = 0 : i64, tpu.core_type = #tpu.core_type<tc>, window_params = [{transform_indices = @transform_0, window_bounds = array<i64: 32, 108>}, {pipeline_mode = #tpu.pipeline_mode<synchronous>, transform_indices = @transform_1, window_bounds = array<i64: 108, 64>}, {pipeline_mode = #tpu.pipeline_mode<synchronous>, transform_indices = @transform_2, window_bounds = array<i64: 1, 64>}, {transform_indices = @transform_3, window_bounds = array<i64: 32, 64>}]} {
    %c0 = arith.constant 0 : index
    %c0_0 = arith.constant 0 : index
    %0 = vector.load %arg1[%c0, %c0_0] : memref<32x108xbf16, #tpu.memory_space<vmem>>, vector<32x108xbf16>
    %c0_1 = arith.constant 0 : index
    %c0_2 = arith.constant 0 : index
    %1 = vector.load %arg2[%c0_1, %c0_2] : memref<108x64xbf16, #tpu.memory_space<vmem>>, vector<108x64xbf16>
    %cst = arith.constant dense<0.000000e+00> : vector<32x64xf32>
    %2 = tpu.matmul %0, %1, %cst {dimension_numbers = #tpu.dot_dimension_numbers<[1], [0], [0], [1], [0, 0, 1, 1], [], []>} : vector<32x108xbf16>, vector<108x64xbf16>, vector<32x64xf32> -> vector<32x64xf32>
    %c0_3 = arith.constant 0 : index
    %c0_4 = arith.constant 0 : index
    %3 = vector.load %arg3[%c0_3, %c0_4] : memref<1x64xf32, #tpu.memory_space<vmem>>, vector<1x64xf32>
    %4 = vector.broadcast %3 : vector<1x64xf32> to vector<32x64xf32>
    %5 = arith.addf %2, %4 : vector<32x64xf32>
    %c0_5 = arith.constant 0 : index
    %c0_6 = arith.constant 0 : index
    %6 = vector.load %arg4[%c0_5, %c0_6] : memref<32x64xf32, #tpu.memory_space<vmem>>, vector<32x64xf32>
    tpu.vector_store %arg4[%c0_5, %c0_6], %5 {strides = array<i32>} : memref<32x64xf32, #tpu.memory_space<vmem>>, vector<32x64xf32>,
    return
  }
  func.func @transform_0(%arg0: i32) -> (i32, i32) {
    %c0_i32 = arith.constant 0 : i32
    %c0_i32_0 = arith.constant 0 : i32
    return %arg0, %c0_i32 : i32, i32
  }
  func.func @transform_1(%arg0: i32) -> (i32, i32) {
    %c0_i32 = arith.constant 0 : i32
    %c0_i32_0 = arith.constant 0 : i32
    %c0_i32_1 = arith.constant 0 : i32
    return %c0_i32, %c0_i32_0 : i32, i32
  }
  func.func @transform_2(%arg0: i32) -> (i32, i32) {
    %c0_i32 = arith.constant 0 : i32
    %c0_i32_0 = arith.constant 0 : i32
    %c0_i32_1 = arith.constant 0 : i32
    return %c0_i32, %c0_i32_0 : i32, i32
  }
  func.func @transform_3(%arg0: i32) -> (i32, i32) {
    %c0_i32 = arith.constant 0 : i32
    %c0_i32_0 = arith.constant 0 : i32
    return %arg0, %c0_i32 : i32, i32
  }
}

module attributes {stable_mosaic.version = 11 : i64} {
  func.func @_linear_kernel(%arg0: i32, %arg1: memref<2x64xbf16, #tpu.memory_space<vmem>>, %arg2: memref<64x128xbf16, #tpu.memory_space<vmem>>, %arg3: memref<1x128xf32, #tpu.memory_space<vmem>>, %arg4: memref<2x128xf32, #tpu.memory_space<vmem>>) attributes {dimension_semantics = [#tpu.dimension_semantics<parallel>], iteration_bounds = array<i64: 1>, scalar_prefetch = 0 : i64, scratch_operands = 0 : i64, tpu.core_type = #tpu.core_type<tc>, window_params = [{transform_indices = @transform_0, window_bounds = array<i64: 2, 64>}, {pipeline_mode = #tpu.pipeline_mode<synchronous>, transform_indices = @transform_1, window_bounds = array<i64: 64, 128>}, {pipeline_mode = #tpu.pipeline_mode<synchronous>, transform_indices = @transform_2, window_bounds = array<i64: 1, 128>}, {transform_indices = @transform_3, window_bounds = array<i64: 2, 128>}]} {
    %c0 = arith.constant 0 : index
    %c0_0 = arith.constant 0 : index
    %0 = vector.load %arg1[%c0, %c0_0] : memref<2x64xbf16, #tpu.memory_space<vmem>>, vector<2x64xbf16>
    %c0_1 = arith.constant 0 : index
    %c0_2 = arith.constant 0 : index
    %1 = vector.load %arg2[%c0_1, %c0_2] : memref<64x128xbf16, #tpu.memory_space<vmem>>, vector<64x128xbf16>
    %cst = arith.constant dense<0.000000e+00> : vector<2x128xf32>
    %2 = tpu.matmul %0, %1, %cst {dimension_numbers = #tpu.dot_dimension_numbers<[1], [0], [0], [1], [0, 0, 1, 1], [], []>} : vector<2x64xbf16>, vector<64x128xbf16>, vector<2x128xf32> -> vector<2x128xf32>
    %c0_3 = arith.constant 0 : index
    %c0_4 = arith.constant 0 : index
    %3 = vector.load %arg3[%c0_3, %c0_4] : memref<1x128xf32, #tpu.memory_space<vmem>>, vector<1x128xf32>
    %4 = vector.broadcast %3 : vector<1x128xf32> to vector<2x128xf32>
    %5 = arith.addf %2, %4 : vector<2x128xf32>
    %c0_5 = arith.constant 0 : index
    %c0_6 = arith.constant 0 : index
    %6 = vector.load %arg4[%c0_5, %c0_6] : memref<2x128xf32, #tpu.memory_space<vmem>>, vector<2x128xf32>
    tpu.vector_store %arg4[%c0_5, %c0_6], %5 {strides = array<i32>} : memref<2x128xf32, #tpu.memory_space<vmem>>, vector<2x128xf32>,
    return
  }
  func.func @transform_0(%arg0: i32) -> (i32, i32) {
    %c0_i32 = arith.constant 0 : i32
    %c0_i32_0 = arith.constant 0 : i32
    return %arg0, %c0_i32 : i32, i32
  }
  func.func @transform_1(%arg0: i32) -> (i32, i32) {
    %c0_i32 = arith.constant 0 : i32
    %c0_i32_0 = arith.constant 0 : i32
    %c0_i32_1 = arith.constant 0 : i32
    return %c0_i32, %c0_i32_0 : i32, i32
  }
  func.func @transform_2(%arg0: i32) -> (i32, i32) {
    %c0_i32 = arith.constant 0 : i32
    %c0_i32_0 = arith.constant 0 : i32
    %c0_i32_1 = arith.constant 0 : i32
    return %c0_i32, %c0_i32_0 : i32, i32
  }
  func.func @transform_3(%arg0: i32) -> (i32, i32) {
    %c0_i32 = arith.constant 0 : i32
    %c0_i32_0 = arith.constant 0 : i32
    return %arg0, %c0_i32 : i32, i32
  }
}

module attributes {stable_mosaic.version = 11 : i64} {
  func.func @_encoder_layer_kernel(%arg0: i32, %arg1: memref<1x24x64xbf16, #tpu.memory_space<vmem>>, %arg2: memref<1x64xf32, #tpu.memory_space<vmem>>, %arg3: memref<1x64xf32, #tpu.memory_space<vmem>>, %arg4: memref<64x192xbf16, #tpu.memory_space<vmem>>, %arg5: memref<1x192xf32, #tpu.memory_space<vmem>>, %arg6: memref<64x64xbf16, #tpu.memory_space<vmem>>, %arg7: memref<1x64xf32, #tpu.memory_space<vmem>>, %arg8: memref<1x64xf32, #tpu.memory_space<vmem>>, %arg9: memref<1x64xf32, #tpu.memory_space<vmem>>, %arg10: memref<64x128xbf16, #tpu.memory_space<vmem>>, %arg11: memref<1x128xf32, #tpu.memory_space<vmem>>, %arg12: memref<128x64xbf16, #tpu.memory_space<vmem>>, %arg13: memref<1x64xf32, #tpu.memory_space<vmem>>, %arg14: memref<1x24x64xbf16, #tpu.memory_space<vmem>>) attributes {dimension_semantics = [#tpu.dimension_semantics<parallel>], iteration_bounds = array<i64: 2>, scalar_prefetch = 0 : i64, scratch_operands = 0 : i64, tpu.core_type = #tpu.core_type<tc>, window_params = [{transform_indices = @transform_0, window_bounds = array<i64: 1, 24, 64>}, {pipeline_mode = #tpu.pipeline_mode<synchronous>, transform_indices = @transform_1, window_bounds = array<i64: 1, 64>}, {pipeline_mode = #tpu.pipeline_mode<synchronous>, transform_indices = @transform_2, window_bounds = array<i64: 1, 64>}, {pipeline_mode = #tpu.pipeline_mode<synchronous>, transform_indices = @transform_3, window_bounds = array<i64: 64, 192>}, {pipeline_mode = #tpu.pipeline_mode<synchronous>, transform_indices = @transform_4, window_bounds = array<i64: 1, 192>}, {pipeline_mode = #tpu.pipeline_mode<synchronous>, transform_indices = @transform_5, window_bounds = array<i64: 64, 64>}, {pipeline_mode = #tpu.pipeline_mode<synchronous>, transform_indices = @transform_6, window_bounds = array<i64: 1, 64>}, {pipeline_mode = #tpu.pipeline_mode<synchronous>, transform_indices = @transform_7, window_bounds = array<i64: 1, 64>}, {pipeline_mode = #tpu.pipeline_mode<synchronous>, transform_indices = @transform_8, window_bounds = array<i64: 1, 64>}, {pipeline_mode = #tpu.pipeline_mode<synchronous>, transform_indices = @transform_9, window_bounds = array<i64: 64, 128>}, {pipeline_mode = #tpu.pipeline_mode<synchronous>, transform_indices = @transform_10, window_bounds = array<i64: 1, 128>}, {pipeline_mode = #tpu.pipeline_mode<synchronous>, transform_indices = @transform_11, window_bounds = array<i64: 128, 64>}, {pipeline_mode = #tpu.pipeline_mode<synchronous>, transform_indices = @transform_12, window_bounds = array<i64: 1, 64>}, {transform_indices = @transform_13, window_bounds = array<i64: 1, 24, 64>}]} {
    %c0 = arith.constant 0 : index
    %c0_0 = arith.constant 0 : index
    %c0_1 = arith.constant 0 : index
    %0 = vector.load %arg1[%c0, %c0_0, %c0_1] : memref<1x24x64xbf16, #tpu.memory_space<vmem>>, vector<1x24x64xbf16>
    %1 = arith.extf %0 : vector<1x24x64xbf16> to vector<1x24x64xf32>
    %2 = vector.shape_cast %1 : vector<1x24x64xf32> to vector<24x64xf32>
    %c0_2 = arith.constant 0 : index
    %c0_3 = arith.constant 0 : index
    %3 = vector.load %arg2[%c0_2, %c0_3] : memref<1x64xf32, #tpu.memory_space<vmem>>, vector<1x64xf32>
    %c0_4 = arith.constant 0 : index
    %c0_5 = arith.constant 0 : index
    %4 = vector.load %arg3[%c0_4, %c0_5] : memref<1x64xf32, #tpu.memory_space<vmem>>, vector<1x64xf32>
    %cst = arith.constant dense<0.000000e+00> : vector<24xf32>
    %5 = vector.multi_reduction <add>, %2, %cst [1] : vector<24x64xf32> to vector<24xf32>
    %6 = vector.shape_cast %5 : vector<24xf32> to vector<24x1xf32>
    %cst_6 = arith.constant 6.400000e+01 : f32
    %7 = vector.broadcast %cst_6 : f32 to vector<24x1xf32>
    %8 = arith.divf %6, %7 : vector<24x1xf32>
    %9 = vector.broadcast %8 : vector<24x1xf32> to vector<24x64xf32>
    %10 = arith.subf %2, %9 : vector<24x64xf32>
    %11 = arith.mulf %10, %10 : vector<24x64xf32>
    %cst_7 = arith.constant dense<0.000000e+00> : vector<24xf32>
    %12 = vector.multi_reduction <add>, %11, %cst_7 [1] : vector<24x64xf32> to vector<24xf32>
    %13 = vector.shape_cast %12 : vector<24xf32> to vector<24x1xf32>
    %cst_8 = arith.constant 6.400000e+01 : f32
    %14 = vector.broadcast %cst_8 : f32 to vector<24x1xf32>
    %15 = arith.divf %13, %14 : vector<24x1xf32>
    %16 = vector.broadcast %8 : vector<24x1xf32> to vector<24x64xf32>
    %17 = arith.subf %2, %16 : vector<24x64xf32>
    %cst_9 = arith.constant 9.99999974E-6 : f32
    %18 = vector.broadcast %cst_9 : f32 to vector<24x1xf32>
    %19 = arith.addf %15, %18 : vector<24x1xf32>
    %20 = math.rsqrt %19 : vector<24x1xf32>
    %21 = vector.broadcast %20 : vector<24x1xf32> to vector<24x64xf32>
    %22 = arith.mulf %17, %21 : vector<24x64xf32>
    %23 = vector.broadcast %3 : vector<1x64xf32> to vector<24x64xf32>
    %24 = arith.mulf %22, %23 : vector<24x64xf32>
    %25 = vector.broadcast %4 : vector<1x64xf32> to vector<24x64xf32>
    %26 = arith.addf %24, %25 : vector<24x64xf32>
    %27 = arith.truncf %26 : vector<24x64xf32> to vector<24x64xbf16>
    %c0_10 = arith.constant 0 : index
    %c0_11 = arith.constant 0 : index
    %28 = vector.load %arg4[%c0_10, %c0_11] : memref<64x192xbf16, #tpu.memory_space<vmem>>, vector<64x192xbf16>
    %cst_12 = arith.constant dense<0.000000e+00> : vector<24x192xf32>
    %29 = tpu.matmul %27, %28, %cst_12 {dimension_numbers = #tpu.dot_dimension_numbers<[1], [0], [0], [1], [0, 0, 1, 1], [], []>} : vector<24x64xbf16>, vector<64x192xbf16>, vector<24x192xf32> -> vector<24x192xf32>
    %c0_13 = arith.constant 0 : index
    %c0_14 = arith.constant 0 : index
    %30 = vector.load %arg5[%c0_13, %c0_14] : memref<1x192xf32, #tpu.memory_space<vmem>>, vector<1x192xf32>
    %31 = vector.broadcast %30 : vector<1x192xf32> to vector<24x192xf32>
    %32 = arith.addf %29, %31 : vector<24x192xf32>
    %33 = arith.truncf %32 : vector<24x192xf32> to vector<24x192xbf16>
    %34 = tpu.iota {dimensions = array<i32: 2>} : vector<1x24x24xi32>
    %c17_i32 = arith.constant 17 : i32
    %35 = vector.broadcast %c17_i32 : i32 to vector<1x24x24xi32>
    %36 = arith.cmpi slt, %34, %35 : vector<1x24x24xi32>
    %cst_15 = arith.constant 0.000000e+00 : f32
    %37 = vector.broadcast %cst_15 : f32 to vector<24x64xf32>
    %38 = vector.extract_strided_slice %33 {offsets = [0, 0], sizes = [24, 16], strides = [1, 1]} : vector<24x192xbf16> to vector<24x16xbf16>
    %39 = vector.shape_cast %38 : vector<24x16xbf16> to vector<1x24x16xbf16>
    %40 = vector.extract_strided_slice %33 {offsets = [0, 64], sizes = [24, 16], strides = [1, 1]} : vector<24x192xbf16> to vector<24x16xbf16>
    %41 = vector.shape_cast %40 : vector<24x16xbf16> to vector<1x24x16xbf16>
    %42 = vector.extract_strided_slice %33 {offsets = [0, 128], sizes = [24, 16], strides = [1, 1]} : vector<24x192xbf16> to vector<24x16xbf16>
    %43 = vector.shape_cast %42 : vector<24x16xbf16> to vector<1x24x16xbf16>
    "tpu.trace_start"() <{level = 10 : i32, message = "bqd,bkd->bqk"}> : () -> ()
    %cst_16 = arith.constant dense<0.000000e+00> : vector<1x24x24xf32>
    %44 = tpu.matmul %39, %41, %cst_16 {dimension_numbers = #tpu.dot_dimension_numbers<[2], [2], [1], [1], [0, 0, 0, 1, 1, 1], [0], [0]>} : vector<1x24x16xbf16>, vector<1x24x16xbf16>, vector<1x24x24xf32> -> vector<1x24x24xf32>
    %cst_17 = arith.constant -1.000000e+30 : f32
    "tpu.trace_stop"() : () -> ()
    %45 = vector.broadcast %cst_17 : f32 to vector<1x24x24xf32>
    %46 = arith.select %36, %44, %45 : vector<1x24x24xi1>, vector<1x24x24xf32>
    %cst_18 = arith.constant dense<0xFF800000> : vector<1x24xf32>
    %47 = vector.multi_reduction <maximumf>, %46, %cst_18 [2] : vector<1x24x24xf32> to vector<1x24xf32>
    %48 = vector.shape_cast %47 : vector<1x24xf32> to vector<1x24x1xf32>
    %49 = vector.broadcast %48 : vector<1x24x1xf32> to vector<1x24x24xf32>
    %50 = arith.subf %46, %49 : vector<1x24x24xf32>
    %51 = math.exp %50 : vector<1x24x24xf32>
    %cst_19 = arith.constant dense<0.000000e+00> : vector<1x24xf32>
    %52 = vector.multi_reduction <add>, %51, %cst_19 [2] : vector<1x24x24xf32> to vector<1x24xf32>
    %53 = vector.shape_cast %52 : vector<1x24xf32> to vector<1x24x1xf32>
    %54 = tpu.reciprocal %53 {approx = true} : vector<1x24x1xf32> -> vector<1x24x1xf32>
    %55 = vector.broadcast %54 : vector<1x24x1xf32> to vector<1x24x24xf32>
    %56 = arith.mulf %51, %55 : vector<1x24x24xf32>
    %57 = arith.truncf %56 : vector<1x24x24xf32> to vector<1x24x24xbf16>
    "tpu.trace_start"() <{level = 10 : i32, message = "bqk,bkd->bqd"}> : () -> ()
    %cst_20 = arith.constant dense<0.000000e+00> : vector<1x24x16xf32>
    %58 = tpu.matmul %57, %43, %cst_20 {dimension_numbers = #tpu.dot_dimension_numbers<[2], [1], [1], [2], [0, 0, 0, 1, 1, 2], [0], [0]>} : vector<1x24x24xbf16>, vector<1x24x16xbf16>, vector<1x24x16xf32> -> vector<1x24x16xf32>
    "tpu.trace_stop"() : () -> ()
    %59 = vector.shape_cast %58 : vector<1x24x16xf32> to vector<24x16xf32>
    %60 = arith.truncf %59 : vector<24x16xf32> to vector<24x16xbf16>
    %c0_21 = arith.constant 0 : index
    %c0_22 = arith.constant 0 : index
    %61 = vector.load %arg6[%c0_21, %c0_22] : memref<64x64xbf16, #tpu.memory_space<vmem>>, vector<16x64xbf16>
    %cst_23 = arith.constant dense<0.000000e+00> : vector<24x64xf32>
    %62 = tpu.matmul %60, %61, %cst_23 {dimension_numbers = #tpu.dot_dimension_numbers<[1], [0], [0], [1], [0, 0, 1, 1], [], []>} : vector<24x16xbf16>, vector<16x64xbf16>, vector<24x64xf32> -> vector<24x64xf32>
    %63 = arith.addf %37, %62 : vector<24x64xf32>
    %64 = vector.extract_strided_slice %33 {offsets = [0, 16], sizes = [24, 16], strides = [1, 1]} : vector<24x192xbf16> to vector<24x16xbf16>
    %65 = vector.shape_cast %64 : vector<24x16xbf16> to vector<1x24x16xbf16>
    %66 = vector.extract_strided_slice %33 {offsets = [0, 80], sizes = [24, 16], strides = [1, 1]} : vector<24x192xbf16> to vector<24x16xbf16>
    %67 = vector.shape_cast %66 : vector<24x16xbf16> to vector<1x24x16xbf16>
    %68 = vector.extract_strided_slice %33 {offsets = [0, 144], sizes = [24, 16], strides = [1, 1]} : vector<24x192xbf16> to vector<24x16xbf16>
    %69 = vector.shape_cast %68 : vector<24x16xbf16> to vector<1x24x16xbf16>
    "tpu.trace_start"() <{level = 10 : i32, message = "bqd,bkd->bqk"}> : () -> ()
    %cst_24 = arith.constant dense<0.000000e+00> : vector<1x24x24xf32>
    %70 = tpu.matmul %65, %67, %cst_24 {dimension_numbers = #tpu.dot_dimension_numbers<[2], [2], [1], [1], [0, 0, 0, 1, 1, 1], [0], [0]>} : vector<1x24x16xbf16>, vector<1x24x16xbf16>, vector<1x24x24xf32> -> vector<1x24x24xf32>
    %cst_25 = arith.constant -1.000000e+30 : f32
    "tpu.trace_stop"() : () -> ()
    %71 = vector.broadcast %cst_25 : f32 to vector<1x24x24xf32>
    %72 = arith.select %36, %70, %71 : vector<1x24x24xi1>, vector<1x24x24xf32>
    %cst_26 = arith.constant dense<0xFF800000> : vector<1x24xf32>
    %73 = vector.multi_reduction <maximumf>, %72, %cst_26 [2] : vector<1x24x24xf32> to vector<1x24xf32>
    %74 = vector.shape_cast %73 : vector<1x24xf32> to vector<1x24x1xf32>
    %75 = vector.broadcast %74 : vector<1x24x1xf32> to vector<1x24x24xf32>
    %76 = arith.subf %72, %75 : vector<1x24x24xf32>
    %77 = math.exp %76 : vector<1x24x24xf32>
    %cst_27 = arith.constant dense<0.000000e+00> : vector<1x24xf32>
    %78 = vector.multi_reduction <add>, %77, %cst_27 [2] : vector<1x24x24xf32> to vector<1x24xf32>
    %79 = vector.shape_cast %78 : vector<1x24xf32> to vector<1x24x1xf32>
    %80 = tpu.reciprocal %79 {approx = true} : vector<1x24x1xf32> -> vector<1x24x1xf32>
    %81 = vector.broadcast %80 : vector<1x24x1xf32> to vector<1x24x24xf32>
    %82 = arith.mulf %77, %81 : vector<1x24x24xf32>
    %83 = arith.truncf %82 : vector<1x24x24xf32> to vector<1x24x24xbf16>
    "tpu.trace_start"() <{level = 10 : i32, message = "bqk,bkd->bqd"}> : () -> ()
    %cst_28 = arith.constant dense<0.000000e+00> : vector<1x24x16xf32>
    %84 = tpu.matmul %83, %69, %cst_28 {dimension_numbers = #tpu.dot_dimension_numbers<[2], [1], [1], [2], [0, 0, 0, 1, 1, 2], [0], [0]>} : vector<1x24x24xbf16>, vector<1x24x16xbf16>, vector<1x24x16xf32> -> vector<1x24x16xf32>
    "tpu.trace_stop"() : () -> ()
    %85 = vector.shape_cast %84 : vector<1x24x16xf32> to vector<24x16xf32>
    %86 = arith.truncf %85 : vector<24x16xf32> to vector<24x16xbf16>
    %c16 = arith.constant 16 : index
    %c0_29 = arith.constant 0 : index
    %87 = vector.load %arg6[%c16, %c0_29] : memref<64x64xbf16, #tpu.memory_space<vmem>>, vector<16x64xbf16>
    %cst_30 = arith.constant dense<0.000000e+00> : vector<24x64xf32>
    %88 = tpu.matmul %86, %87, %cst_30 {dimension_numbers = #tpu.dot_dimension_numbers<[1], [0], [0], [1], [0, 0, 1, 1], [], []>} : vector<24x16xbf16>, vector<16x64xbf16>, vector<24x64xf32> -> vector<24x64xf32>
    %89 = arith.addf %63, %88 : vector<24x64xf32>
    %90 = vector.extract_strided_slice %33 {offsets = [0, 32], sizes = [24, 16], strides = [1, 1]} : vector<24x192xbf16> to vector<24x16xbf16>
    %91 = vector.shape_cast %90 : vector<24x16xbf16> to vector<1x24x16xbf16>
    %92 = vector.extract_strided_slice %33 {offsets = [0, 96], sizes = [24, 16], strides = [1, 1]} : vector<24x192xbf16> to vector<24x16xbf16>
    %93 = vector.shape_cast %92 : vector<24x16xbf16> to vector<1x24x16xbf16>
    %94 = vector.extract_strided_slice %33 {offsets = [0, 160], sizes = [24, 16], strides = [1, 1]} : vector<24x192xbf16> to vector<24x16xbf16>
    %95 = vector.shape_cast %94 : vector<24x16xbf16> to vector<1x24x16xbf16>
    "tpu.trace_start"() <{level = 10 : i32, message = "bqd,bkd->bqk"}> : () -> ()
    %cst_31 = arith.constant dense<0.000000e+00> : vector<1x24x24xf32>
    %96 = tpu.matmul %91, %93, %cst_31 {dimension_numbers = #tpu.dot_dimension_numbers<[2], [2], [1], [1], [0, 0, 0, 1, 1, 1], [0], [0]>} : vector<1x24x16xbf16>, vector<1x24x16xbf16>, vector<1x24x24xf32> -> vector<1x24x24xf32>
    %cst_32 = arith.constant -1.000000e+30 : f32
    "tpu.trace_stop"() : () -> ()
    %97 = vector.broadcast %cst_32 : f32 to vector<1x24x24xf32>
    %98 = arith.select %36, %96, %97 : vector<1x24x24xi1>, vector<1x24x24xf32>
    %cst_33 = arith.constant dense<0xFF800000> : vector<1x24xf32>
    %99 = vector.multi_reduction <maximumf>, %98, %cst_33 [2] : vector<1x24x24xf32> to vector<1x24xf32>
    %100 = vector.shape_cast %99 : vector<1x24xf32> to vector<1x24x1xf32>
    %101 = vector.broadcast %100 : vector<1x24x1xf32> to vector<1x24x24xf32>
    %102 = arith.subf %98, %101 : vector<1x24x24xf32>
    %103 = math.exp %102 : vector<1x24x24xf32>
    %cst_34 = arith.constant dense<0.000000e+00> : vector<1x24xf32>
    %104 = vector.multi_reduction <add>, %103, %cst_34 [2] : vector<1x24x24xf32> to vector<1x24xf32>
    %105 = vector.shape_cast %104 : vector<1x24xf32> to vector<1x24x1xf32>
    %106 = tpu.reciprocal %105 {approx = true} : vector<1x24x1xf32> -> vector<1x24x1xf32>
    %107 = vector.broadcast %106 : vector<1x24x1xf32> to vector<1x24x24xf32>
    %108 = arith.mulf %103, %107 : vector<1x24x24xf32>
    %109 = arith.truncf %108 : vector<1x24x24xf32> to vector<1x24x24xbf16>
    "tpu.trace_start"() <{level = 10 : i32, message = "bqk,bkd->bqd"}> : () -> ()
    %cst_35 = arith.constant dense<0.000000e+00> : vector<1x24x16xf32>
    %110 = tpu.matmul %109, %95, %cst_35 {dimension_numbers = #tpu.dot_dimension_numbers<[2], [1], [1], [2], [0, 0, 0, 1, 1, 2], [0], [0]>} : vector<1x24x24xbf16>, vector<1x24x16xbf16>, vector<1x24x16xf32> -> vector<1x24x16xf32>
    "tpu.trace_stop"() : () -> ()
    %111 = vector.shape_cast %110 : vector<1x24x16xf32> to vector<24x16xf32>
    %112 = arith.truncf %111 : vector<24x16xf32> to vector<24x16xbf16>
    %c32 = arith.constant 32 : index
    %c0_36 = arith.constant 0 : index
    %113 = vector.load %arg6[%c32, %c0_36] : memref<64x64xbf16, #tpu.memory_space<vmem>>, vector<16x64xbf16>
    %cst_37 = arith.constant dense<0.000000e+00> : vector<24x64xf32>
    %114 = tpu.matmul %112, %113, %cst_37 {dimension_numbers = #tpu.dot_dimension_numbers<[1], [0], [0], [1], [0, 0, 1, 1], [], []>} : vector<24x16xbf16>, vector<16x64xbf16>, vector<24x64xf32> -> vector<24x64xf32>
    %115 = arith.addf %89, %114 : vector<24x64xf32>
    %116 = vector.extract_strided_slice %33 {offsets = [0, 48], sizes = [24, 16], strides = [1, 1]} : vector<24x192xbf16> to vector<24x16xbf16>
    %117 = vector.shape_cast %116 : vector<24x16xbf16> to vector<1x24x16xbf16>
    %118 = vector.extract_strided_slice %33 {offsets = [0, 112], sizes = [24, 16], strides = [1, 1]} : vector<24x192xbf16> to vector<24x16xbf16>
    %119 = vector.shape_cast %118 : vector<24x16xbf16> to vector<1x24x16xbf16>
    %120 = vector.extract_strided_slice %33 {offsets = [0, 176], sizes = [24, 16], strides = [1, 1]} : vector<24x192xbf16> to vector<24x16xbf16>
    %121 = vector.shape_cast %120 : vector<24x16xbf16> to vector<1x24x16xbf16>
    "tpu.trace_start"() <{level = 10 : i32, message = "bqd,bkd->bqk"}> : () -> ()
    %cst_38 = arith.constant dense<0.000000e+00> : vector<1x24x24xf32>
    %122 = tpu.matmul %117, %119, %cst_38 {dimension_numbers = #tpu.dot_dimension_numbers<[2], [2], [1], [1], [0, 0, 0, 1, 1, 1], [0], [0]>} : vector<1x24x16xbf16>, vector<1x24x16xbf16>, vector<1x24x24xf32> -> vector<1x24x24xf32>
    %cst_39 = arith.constant -1.000000e+30 : f32
    "tpu.trace_stop"() : () -> ()
    %123 = vector.broadcast %cst_39 : f32 to vector<1x24x24xf32>
    %124 = arith.select %36, %122, %123 : vector<1x24x24xi1>, vector<1x24x24xf32>
    %cst_40 = arith.constant dense<0xFF800000> : vector<1x24xf32>
    %125 = vector.multi_reduction <maximumf>, %124, %cst_40 [2] : vector<1x24x24xf32> to vector<1x24xf32>
    %126 = vector.shape_cast %125 : vector<1x24xf32> to vector<1x24x1xf32>
    %127 = vector.broadcast %126 : vector<1x24x1xf32> to vector<1x24x24xf32>
    %128 = arith.subf %124, %127 : vector<1x24x24xf32>
    %129 = math.exp %128 : vector<1x24x24xf32>
    %cst_41 = arith.constant dense<0.000000e+00> : vector<1x24xf32>
    %130 = vector.multi_reduction <add>, %129, %cst_41 [2] : vector<1x24x24xf32> to vector<1x24xf32>
    %131 = vector.shape_cast %130 : vector<1x24xf32> to vector<1x24x1xf32>
    %132 = tpu.reciprocal %131 {approx = true} : vector<1x24x1xf32> -> vector<1x24x1xf32>
    %133 = vector.broadcast %132 : vector<1x24x1xf32> to vector<1x24x24xf32>
    %134 = arith.mulf %129, %133 : vector<1x24x24xf32>
    %135 = arith.truncf %134 : vector<1x24x24xf32> to vector<1x24x24xbf16>
    "tpu.trace_start"() <{level = 10 : i32, message = "bqk,bkd->bqd"}> : () -> ()
    %cst_42 = arith.constant dense<0.000000e+00> : vector<1x24x16xf32>
    %136 = tpu.matmul %135, %121, %cst_42 {dimension_numbers = #tpu.dot_dimension_numbers<[2], [1], [1], [2], [0, 0, 0, 1, 1, 2], [0], [0]>} : vector<1x24x24xbf16>, vector<1x24x16xbf16>, vector<1x24x16xf32> -> vector<1x24x16xf32>
    "tpu.trace_stop"() : () -> ()
    %137 = vector.shape_cast %136 : vector<1x24x16xf32> to vector<24x16xf32>
    %138 = arith.truncf %137 : vector<24x16xf32> to vector<24x16xbf16>
    %c48 = arith.constant 48 : index
    %c0_43 = arith.constant 0 : index
    %139 = vector.load %arg6[%c48, %c0_43] : memref<64x64xbf16, #tpu.memory_space<vmem>>, vector<16x64xbf16>
    %cst_44 = arith.constant dense<0.000000e+00> : vector<24x64xf32>
    %140 = tpu.matmul %138, %139, %cst_44 {dimension_numbers = #tpu.dot_dimension_numbers<[1], [0], [0], [1], [0, 0, 1, 1], [], []>} : vector<24x16xbf16>, vector<16x64xbf16>, vector<24x64xf32> -> vector<24x64xf32>
    %141 = arith.addf %115, %140 : vector<24x64xf32>
    %142 = arith.addf %2, %141 : vector<24x64xf32>
    %c0_45 = arith.constant 0 : index
    %c0_46 = arith.constant 0 : index
    %143 = vector.load %arg7[%c0_45, %c0_46] : memref<1x64xf32, #tpu.memory_space<vmem>>, vector<1x64xf32>
    %144 = vector.broadcast %143 : vector<1x64xf32> to vector<24x64xf32>
    %145 = arith.addf %142, %144 : vector<24x64xf32>
    %c0_47 = arith.constant 0 : index
    %c0_48 = arith.constant 0 : index
    %146 = vector.load %arg8[%c0_47, %c0_48] : memref<1x64xf32, #tpu.memory_space<vmem>>, vector<1x64xf32>
    %c0_49 = arith.constant 0 : index
    %c0_50 = arith.constant 0 : index
    %147 = vector.load %arg9[%c0_49, %c0_50] : memref<1x64xf32, #tpu.memory_space<vmem>>, vector<1x64xf32>
    %cst_51 = arith.constant dense<0.000000e+00> : vector<24xf32>
    %148 = vector.multi_reduction <add>, %145, %cst_51 [1] : vector<24x64xf32> to vector<24xf32>
    %149 = vector.shape_cast %148 : vector<24xf32> to vector<24x1xf32>
    %cst_52 = arith.constant 6.400000e+01 : f32
    %150 = vector.broadcast %cst_52 : f32 to vector<24x1xf32>
    %151 = arith.divf %149, %150 : vector<24x1xf32>
    %152 = vector.broadcast %151 : vector<24x1xf32> to vector<24x64xf32>
    %153 = arith.subf %145, %152 : vector<24x64xf32>
    %154 = arith.mulf %153, %153 : vector<24x64xf32>
    %cst_53 = arith.constant dense<0.000000e+00> : vector<24xf32>
    %155 = vector.multi_reduction <add>, %154, %cst_53 [1] : vector<24x64xf32> to vector<24xf32>
    %156 = vector.shape_cast %155 : vector<24xf32> to vector<24x1xf32>
    %cst_54 = arith.constant 6.400000e+01 : f32
    %157 = vector.broadcast %cst_54 : f32 to vector<24x1xf32>
    %158 = arith.divf %156, %157 : vector<24x1xf32>
    %159 = vector.broadcast %151 : vector<24x1xf32> to vector<24x64xf32>
    %160 = arith.subf %145, %159 : vector<24x64xf32>
    %cst_55 = arith.constant 9.99999974E-6 : f32
    %161 = vector.broadcast %cst_55 : f32 to vector<24x1xf32>
    %162 = arith.addf %158, %161 : vector<24x1xf32>
    %163 = math.rsqrt %162 : vector<24x1xf32>
    %164 = vector.broadcast %163 : vector<24x1xf32> to vector<24x64xf32>
    %165 = arith.mulf %160, %164 : vector<24x64xf32>
    %166 = vector.broadcast %146 : vector<1x64xf32> to vector<24x64xf32>
    %167 = arith.mulf %165, %166 : vector<24x64xf32>
    %168 = vector.broadcast %147 : vector<1x64xf32> to vector<24x64xf32>
    %169 = arith.addf %167, %168 : vector<24x64xf32>
    %170 = arith.truncf %169 : vector<24x64xf32> to vector<24x64xbf16>
    %c0_56 = arith.constant 0 : index
    %c0_57 = arith.constant 0 : index
    %171 = vector.load %arg10[%c0_56, %c0_57] : memref<64x128xbf16, #tpu.memory_space<vmem>>, vector<64x128xbf16>
    %cst_58 = arith.constant dense<0.000000e+00> : vector<24x128xf32>
    %172 = tpu.matmul %170, %171, %cst_58 {dimension_numbers = #tpu.dot_dimension_numbers<[1], [0], [0], [1], [0, 0, 1, 1], [], []>} : vector<24x64xbf16>, vector<64x128xbf16>, vector<24x128xf32> -> vector<24x128xf32>
    %c0_59 = arith.constant 0 : index
    %c0_60 = arith.constant 0 : index
    %173 = vector.load %arg11[%c0_59, %c0_60] : memref<1x128xf32, #tpu.memory_space<vmem>>, vector<1x128xf32>
    %174 = vector.broadcast %173 : vector<1x128xf32> to vector<24x128xf32>
    %175 = arith.addf %172, %174 : vector<24x128xf32>
    %cst_61 = arith.constant 0.000000e+00 : f32
    %176 = vector.broadcast %cst_61 : f32 to vector<24x128xf32>
    %177 = arith.maximumf %175, %176 : vector<24x128xf32>
    %178 = arith.truncf %177 : vector<24x128xf32> to vector<24x128xbf16>
    %c0_62 = arith.constant 0 : index
    %c0_63 = arith.constant 0 : index
    %179 = vector.load %arg12[%c0_62, %c0_63] : memref<128x64xbf16, #tpu.memory_space<vmem>>, vector<128x64xbf16>
    %cst_64 = arith.constant dense<0.000000e+00> : vector<24x64xf32>
    %180 = tpu.matmul %178, %179, %cst_64 {dimension_numbers = #tpu.dot_dimension_numbers<[1], [0], [0], [1], [0, 0, 1, 1], [], []>} : vector<24x128xbf16>, vector<128x64xbf16>, vector<24x64xf32> -> vector<24x64xf32>
    %c0_65 = arith.constant 0 : index
    %c0_66 = arith.constant 0 : index
    %181 = vector.load %arg13[%c0_65, %c0_66] : memref<1x64xf32, #tpu.memory_space<vmem>>, vector<1x64xf32>
    %182 = vector.broadcast %181 : vector<1x64xf32> to vector<24x64xf32>
    %183 = arith.addf %180, %182 : vector<24x64xf32>
    %184 = arith.addf %145, %183 : vector<24x64xf32>
    %185 = vector.shape_cast %184 : vector<24x64xf32> to vector<1x24x64xf32>
    %186 = arith.truncf %185 : vector<1x24x64xf32> to vector<1x24x64xbf16>
    %c0_67 = arith.constant 0 : index
    %c0_68 = arith.constant 0 : index
    %c0_69 = arith.constant 0 : index
    %187 = vector.load %arg14[%c0_67, %c0_68, %c0_69] : memref<1x24x64xbf16, #tpu.memory_space<vmem>>, vector<1x24x64xbf16>
    tpu.vector_store %arg14[%c0_67, %c0_68, %c0_69], %186 {strides = array<i32>} : memref<1x24x64xbf16, #tpu.memory_space<vmem>>, vector<1x24x64xbf16>,
    return
  }
  func.func @transform_0(%arg0: i32) -> (i32, i32, i32) {
    %c0_i32 = arith.constant 0 : i32
    %c0_i32_0 = arith.constant 0 : i32
    %c0_i32_1 = arith.constant 0 : i32
    return %arg0, %c0_i32, %c0_i32_0 : i32, i32, i32
  }
  func.func @transform_1(%arg0: i32) -> (i32, i32) {
    %c0_i32 = arith.constant 0 : i32
    %c0_i32_0 = arith.constant 0 : i32
    %c0_i32_1 = arith.constant 0 : i32
    return %c0_i32, %c0_i32_0 : i32, i32
  }
  func.func @transform_2(%arg0: i32) -> (i32, i32) {
    %c0_i32 = arith.constant 0 : i32
    %c0_i32_0 = arith.constant 0 : i32
    %c0_i32_1 = arith.constant 0 : i32
    return %c0_i32, %c0_i32_0 : i32, i32
  }
  func.func @transform_3(%arg0: i32) -> (i32, i32) {
    %c0_i32 = arith.constant 0 : i32
    %c0_i32_0 = arith.constant 0 : i32
    %c0_i32_1 = arith.constant 0 : i32
    return %c0_i32, %c0_i32_0 : i32, i32
  }
  func.func @transform_4(%arg0: i32) -> (i32, i32) {
    %c0_i32 = arith.constant 0 : i32
    %c0_i32_0 = arith.constant 0 : i32
    %c0_i32_1 = arith.constant 0 : i32
    return %c0_i32, %c0_i32_0 : i32, i32
  }
  func.func @transform_5(%arg0: i32) -> (i32, i32) {
    %c0_i32 = arith.constant 0 : i32
    %c0_i32_0 = arith.constant 0 : i32
    %c0_i32_1 = arith.constant 0 : i32
    return %c0_i32, %c0_i32_0 : i32, i32
  }
  func.func @transform_6(%arg0: i32) -> (i32, i32) {
    %c0_i32 = arith.constant 0 : i32
    %c0_i32_0 = arith.constant 0 : i32
    %c0_i32_1 = arith.constant 0 : i32
    return %c0_i32, %c0_i32_0 : i32, i32
  }
  func.func @transform_7(%arg0: i32) -> (i32, i32) {
    %c0_i32 = arith.constant 0 : i32
    %c0_i32_0 = arith.constant 0 : i32
    %c0_i32_1 = arith.constant 0 : i32
    return %c0_i32, %c0_i32_0 : i32, i32
  }
  func.func @transform_8(%arg0: i32) -> (i32, i32) {
    %c0_i32 = arith.constant 0 : i32
    %c0_i32_0 = arith.constant 0 : i32
    %c0_i32_1 = arith.constant 0 : i32
    return %c0_i32, %c0_i32_0 : i32, i32
  }
  func.func @transform_9(%arg0: i32) -> (i32, i32) {
    %c0_i32 = arith.constant 0 : i32
    %c0_i32_0 = arith.constant 0 : i32
    %c0_i32_1 = arith.constant 0 : i32
    return %c0_i32, %c0_i32_0 : i32, i32
  }
  func.func @transform_10(%arg0: i32) -> (i32, i32) {
    %c0_i32 = arith.constant 0 : i32
    %c0_i32_0 = arith.constant 0 : i32
    %c0_i32_1 = arith.constant 0 : i32
    return %c0_i32, %c0_i32_0 : i32, i32
  }
  func.func @transform_11(%arg0: i32) -> (i32, i32) {
    %c0_i32 = arith.constant 0 : i32
    %c0_i32_0 = arith.constant 0 : i32
    %c0_i32_1 = arith.constant 0 : i32
    return %c0_i32, %c0_i32_0 : i32, i32
  }
  func.func @transform_12(%arg0: i32) -> (i32, i32) {
    %c0_i32 = arith.constant 0 : i32
    %c0_i32_0 = arith.constant 0 : i32
    %c0_i32_1 = arith.constant 0 : i32
    return %c0_i32, %c0_i32_0 : i32, i32
  }
  func.func @transform_13(%arg0: i32) -> (i32, i32, i32) {
    %c0_i32 = arith.constant 0 : i32
    %c0_i32_0 = arith.constant 0 : i32
    %c0_i32_1 = arith.constant 0 : i32
    return %arg0, %c0_i32, %c0_i32_0 : i32, i32, i32
  }
}

</mosaic_0001>

<bundles_post_ra>
// kernel: vit_forward.7
= control target key start
LH: loop header
LB: loop body
LE: loop exit
PB: predicated region body
PF: predicated region fallthrough
CT: control target
= control target key end

     0   :  { %v169_v1 = vmov 0.0   ;;  %vm170_vm0 = vmmov 0   ;;  %s222_s0 = inlined_call_operand.vmem [shape: bf16[2,64], index: 0, kind: input, shape index: {}]   ;;  %s223_s1 = inlined_call_operand.vmem [shape: bf16[64,128], index: 1, kind: input, shape index: {}]   ;;  %s224_s2 = inlined_call_operand.vmem [shape: f32[1,128], index: 2, kind: input, shape index: {}]   ;;  %s225_s3 = inlined_call_operand.hbm [shape: f32[2,128], index: 3, kind: output, shape index: {}]  }
   0x1   :  { %v141_v0 = vld [vmem:[%s223_s1] sm:$0xff]   ;;  %126 = vmatprep.subr.bf16.mxu0 %v169_v1  ;;  %v142_v2 = vld [vmem:[%s223_s1 + $0x8] sm:$0xff]   ;;  %134 = vmatprep.mubr.msk.bf16.mxu0 %vm170_vm0, %v169_v1 }
   0x2   :  { %127 = vmatpush3.bf16.msra.mxu0 %v141_v0 }
   0x3   :  { %128 = vmatprep.subr.bf16.mxu0 %v169_v1 }
   0x4   :  { %8 = vsyncpa [#allocation3], 0  ;;  %v143_v3 = vld [vmem:[%s223_s1 + $0x10] sm:$0xff]   ;;  %v144_v4 = vld [vmem:[%s223_s1 + $0x18] sm:$0xff]   ;;  %vm56_vm1 = vcmask 523264   ;;  %s171_s24 = smov [#allocation2]  }
   0x5   :  { %v16_v5 = vld [vmem:[%s222_s0] sm:$0x1]  ;;  %s107_s25 = sshll.u32 %s171_s24, 4  ;;  %s108_s25 = int_to_ptr.vmem [resolvable:$true] %s107_s25 }
   0x6   :  { %129 = vmatpush3.bf16.msra.mxu0 %v142_v2  ;;  %v115_v6 = vld [vmem:[%s224_s2] ss:$0 sm:$0xff]  ;;  %s145_s1 = scalar_lea.vmem %s108_s25, 32  ;;  %p150_p1 = scmp.lt.s32.totalorder %s108_s25, %s108_s25 }
   0x7   :  { %130 = vmatprep.subr.bf16.mxu0 %v169_v1  ;;  %p146_p0 = scmp.ne.s32.totalorder %s108_s25, %s145_s1  ;;  %p151_p2 = scmp.lt.s32.totalorder %s145_s1, %s145_s1 }
   0x9   :  { %p152_p3 = por %p151_p2, %p150_p1 }
   0xa   :  { %131 = vmatpush3.bf16.msra.mxu0 %v143_v3 }
   0xb   :  { %132 = vmatprep.subr.bf16.mxu0 %v169_v1  ;;  %p153_p4 = pnand %p152_p3, %p146_p0 }
   0xe   :  { %133 = vmatpush3.bf16.msra.mxu0 %v144_v4 }
  0x11   :  { %135 = vmatmul.mubr.msk.bf16.vlgmr.msra.gmra.mrb[0].mxu0 %vm56_vm1, %v16_v5 }
  0xe4   :  { %v94_v7 = vpop.f32.mrb[0].mxu0 }
  0xe5   :  { %v95_v8 = vadd.f32 %v115_v6, %v94_v7  ;;  %v136_v9 = vpop.f32.mrb[1].mxu0 }
  0xe6   :  { %v97_v10 = vpop.f32.mrb[2].mxu0 }
  0xe7   :  { %100 = vst [vmem:[#allocation2] sm:$0x3] %v95_v8  ;;  %v137_v11 = vpop.f32.mrb[3].mxu0 }
  0xe8   :  { %156 = shalt.err (!%p153_p4)
}
  0xe9   :  { %s157_s2 = scalar_lea.hbm %s225_s3, 32 }
  0xea   :  { %p158_p5 = scmp.ne.s32.totalorder %s225_s3, %s157_s2  ;;  %p161_p6 = scmp.lt.u32.totalorder %s157_s2, %s225_s3 }
  0xec   :  { %p163_p7 = pnand %p161_p6, %p158_p5 }
  0xee   :  { %166 = shalt.err (!%p163_p7)
}
  0xef   :  { %110 = dma.vmem_to_hbm [thread:$0]  %s108_s25, 32, %s225_s3, [#allocation3]  }
  0xf0   :  { %167 = dma.done.wait [#allocation3], 32  }
  0xf1   :  { %168 = vsyncadd [#allocation3], 4294967264 }
  0xf2   :  { %114 = vsyncpa [#allocation3], 1 }

// kernel: vit_forward.4
= control target key start
LH: loop header
LB: loop body
LE: loop exit
PB: predicated region body
PF: predicated region fallthrough
CT: control target
= control target key end

     0   :  { %vm91_vm0 = vcmask 883712   ;;  %vm98_vm1 = vcmask 1045504   ;;  %vm151_vm2 = vcmask 523264   ;;  %s273_s1 = inlined_call_operand.vmem [shape: bf16[108,64], index: 1, kind: input, shape index: {}]   ;;  %s274_s0 = inlined_call_operand.vmem [shape: bf16[32,108], index: 0, kind: input, shape index: {}]   ;;  %s275_s2 = inlined_call_operand.vmem [shape: f32[1,64], index: 2, kind: input, shape index: {}]   ;;  %s276_s3 = inlined_call_operand.vmem [shape: f32[32,64], index: 3, kind: output, shape index: {}]  }
   0x1   :  { %v200_v0 = vld [vmem:[%s273_s1] sm:$0xff]   ;;  %v201_v1 = vld [vmem:[%s273_s1 + $0x8] sm:$0xff]   ;;  %v202_v2 = vld [vmem:[%s273_s1 + $0x10] sm:$0xff]  }
   0x2   :  { %181 = vmatprep.subr.bf16.mxu0 %v200_v0  ;;  %v207_v3 = vld [vmem:[%s274_s0] sm:$0xff]   ;;  %v203_v4 = vld [vmem:[%s273_s1 + $0x18] sm:$0xff]   ;;  %v205_v6 = vld [vmem:[%s273_s1 + $0x28] sm:$0xff]  }
   0x3   :  { %182 = vmatpush3.bf16.msra.mxu0 %v200_v0  ;;  %195 = vmatprep.mubr.msk.bf16.mxu0 %vm91_vm0, %v207_v3  ;;  %v204_v5 = vld [vmem:[%s273_s1 + $0x20] sm:$0xff]   ;;  %v206_v7 = vld [vmem:[%s273_s1 + $0x30] sm:$0x3f]   ;;  %v208_v9 = vld [vmem:[%s274_s0 + $0x8] sm:$0xff]  }
   0x4   :  { %183 = vmatprep.subr.bf16.mxu0 %v201_v1  ;;  %v100_v8 = vsel %vm98_vm1, %v206_v7, 0  ;;  %v160_v10 = vld [vmem:[%s275_s2] ss:$0 sm:$0xff] }
   0x7   :  { %184 = vmatpush3.bf16.msra.mxu0 %v201_v1 }
   0x8   :  { %185 = vmatprep.subr.bf16.mxu0 %v202_v2 }
   0xb   :  { %186 = vmatpush3.bf16.msra.mxu0 %v202_v2 }
   0xc   :  { %187 = vmatprep.subr.bf16.mxu0 %v203_v4 }
   0xf   :  { %188 = vmatpush3.bf16.msra.mxu0 %v203_v4 }
  0x10   :  { %189 = vmatprep.subr.bf16.mxu0 %v204_v5 }
  0x13   :  { %190 = vmatpush3.bf16.msra.mxu0 %v204_v5 }
  0x14   :  { %191 = vmatprep.subr.bf16.mxu0 %v205_v6 }
  0x17   :  { %192 = vmatpush3.bf16.msra.mxu0 %v205_v6 }
  0x18   :  { %199 = vmatprep.subr.msk.bf16.mxu0 %vm98_vm1, %v206_v7 }
  0x1b   :  { %194 = vmatpush3.bf16.msra.mxu0 %v100_v8 }
  0x1e   :  { %196 = vmatmul.mubr.msk.bf16.vlgmr.msra.gmra.mrb[0].mxu0 %vm91_vm0, %v208_v9 }
  0xf1   :  { %v197_v11 = vpop.f32.mrb[0].mxu0 }
  0xf2   :  { %v145_v12 = vadd.f32 %v197_v11, %v160_v10  ;;  %v136_v13 = vpop.f32.mrb[1].mxu0 }
  0xf3   :  { %v137_v14 = vadd.f32 %v160_v10, %v136_v13  ;;  %v198_v15 = vpop.f32.mrb[2].mxu0 }
  0xf4   :  { %154 = vst.msk [vmem:[%s276_s3 + $0x10] sm:$0xff] %vm151_vm2, %v145_v12  ;;  %v148_v16 = vadd.f32 %v198_v15, %v160_v10  ;;  %v139_v17 = vpop.f32.mrb[3].mxu0 }
  0xf5   :  { %152 = vst.msk [vmem:[%s276_s3] sm:$0xff] %vm151_vm2, %v137_v14  ;;  %v140_v18 = vadd.f32 %v160_v10, %v139_v17 }
  0xf6   :  { %155 = vst.msk [vmem:[%s276_s3 + $0x18] sm:$0xff] %vm151_vm2, %v148_v16 }
  0xf7   :  { %153 = vst.msk [vmem:[%s276_s3 + $0x8] sm:$0xff] %vm151_vm2, %v140_v18 }

// kernel: vit_forward.5
= control target key start
LH: loop header
LB: loop body
LE: loop exit
PB: predicated region body
PF: predicated region fallthrough
CT: control target
= control target key end

     0   :  { %s2394_s25 = smov 0   ;;  %s2719_s0 = inlined_call_operand.vmem [shape: bf16[2,24,64], index: 0, kind: input, shape index: {}]   ;;  %s2720_s1 = inlined_call_operand.vmem [shape: f32[1,64], index: 1, kind: input, shape index: {}]   ;;  %s2721_s2 = inlined_call_operand.vmem [shape: f32[1,64], index: 2, kind: input, shape index: {}]   ;;  %s2722_s3 = inlined_call_operand.vmem [shape: bf16[64,192], index: 3, kind: input, shape index: {}]   ;;  %s2723_s4 = inlined_call_operand.vmem [shape: f32[1,192], index: 4, kind: input, shape index: {}]   ;;  %s2724_s5 = inlined_call_operand.vmem [shape: bf16[64,64], index: 5, kind: input, shape index: {}]   ;;  %s2725_s6 = inlined_call_operand.vmem [shape: f32[1,64], index: 6, kind: input, shape index: {}]   ;;  %s2726_s7 = inlined_call_operand.vmem [shape: f32[1,64], index: 7, kind: input, shape index: {}]   ;;  %s2727_s8 = inlined_call_operand.vmem [shape: f32[1,64], index: 8, kind: input, shape index: {}]   ;;  %s2728_s9 = inlined_call_operand.vmem [shape: bf16[64,128], index: 9, kind: input, shape index: {}]   ;;  %s2729_s10 = inlined_call_operand.vmem [shape: f32[1,128], index: 10, kind: input, shape index: {}]   ;;  %s2730_s11 = inlined_call_operand.vmem [shape: bf16[128,64], index: 11, kind: input, shape index: {}]   ;;  %s2731_s12 = inlined_call_operand.vmem [shape: f32[1,64], index: 12, kind: input, shape index: {}]   ;;  %s2732_s13 = inlined_call_operand.vmem [shape: bf16[2,24,64], index: 13, kind: output, shape index: {}]  }
   0x1 LB: > { %s1933_s26 = sadd.s32 4294967295, %s2314_s25   ;;  %p1937_p0 = scmp.ge.s32.totalorder %s2314_s25, 1  ;;  %s2314_s25 = sphi %s2394_s25, %s23_s25  }
   0x2   : > { %p387_p1 = scmp.lt.s32.totalorder %s2314_s25, 3 }
   0x4   : > { %p388_p2 = pnand %p1937_p0, %p387_p1 }
   0x5   : > { %p431_p3 = scmp.lt.s32.totalorder (!%p388_p2), %s1933_s26, 1  ;;  %vm450_vm0 = vcmask (!%p388_p2), 523264   ;;  %v2220_v23 = vld [vmem:[%s2722_s3 + $0x4] ss:$8 sps:$4 sm:$0xff] (!%p388_p2)   ;;  %v2222_v24 = vld [vmem:[%s2722_s3] ss:$8 sps:$4 sm:$0xff] (!%p388_p2)   ;;  %v521_v57 = vlaneseq (!%p388_p2) }
   0x6   : > { %391 = sbr.rel (%p388_p2) target bundleno = 3511 (0xdb7), region = 72  ;;  %577 = vmatprep.subr.bf16.mxu0 (!%p388_p2), %v2220_v23  ;;  %v2223_v25 = vld [vmem:[%s2722_s3 + $0x14] ss:$8 sps:$4 sm:$0xff] (!%p388_p2)   ;;  %v2225_v26 = vld [vmem:[%s2722_s3 + $0x10] ss:$8 sps:$4 sm:$0xff] (!%p388_p2)   ;;  %v2316_v31 = vmov (!%p388_p2), 0  }
   0x7   : > { %578 = vmatpush1.bf16.msra.mxu0 (!%p388_p2), %v2222_v24  ;;  %v2226_v27 = vld [vmem:[%s2722_s3 + $0x24] ss:$8 sps:$4 sm:$0xff] (!%p388_p2)   ;;  %v2228_v28 = vld [vmem:[%s2722_s3 + $0x20] ss:$8 sps:$4 sm:$0xff] (!%p388_p2)   ;;  %v2229_v29 = vld [vmem:[%s2722_s3 + $0x34] ss:$8 sps:$4 sm:$0xff] (!%p388_p2)   ;;  %609 = vmatprep.mubr.bf16.mxu0 (!%p388_p2), %v2316_v31 }
   0x8   : > { %579 = vmatprep.subr.bf16.mxu0 (!%p388_p2), %v2223_v25  ;;  %v2231_v30 = vld [vmem:[%s2722_s3 + $0x30] ss:$8 sps:$4 sm:$0xff] (!%p388_p2)   ;;  %v1940_v43 = vld [vmem:[%s2720_s1] ss:$0 sm:$0xff] (!%p388_p2)  ;;  %v522_v58 = vshrl.u32 (!%p388_p2), %v521_v57, 7  ;;  %vm641_vm1 = vcmask (!%p388_p2), 130048  }
   0x9   : > { %v1941_v48 = vld [vmem:[%s2721_s2] ss:$0 sm:$0xff] (!%p388_p2)  ;;  %s2317_s22 = smov (!%p388_p2), 48   ;;  %s2318_s23 = smov (!%p388_p2), 112   ;;  %v2487_v25 = vand.u32 (!%p388_p2), 127, %v521_v57  ;;  %vm705_vm3 = vcmask (!%p388_p2), 195584  }
   0xa   : > { %v523_v59 = vsub.s32 (!%p388_p2), 0, %v522_v58  ;;  %v519_v60 = vld [vmem:[%s2723_s4] sm:$0x3] (!%p388_p2)  ;;  %v527_v61 = vsub.s32 (!%p388_p2), 1, %v522_v58  ;;  %s2319_s24 = smov (!%p388_p2), 64   ;;  %s2320_s28 = smov (!%p388_p2), 32  }
   0xb   : > { %580 = vmatpush1.bf16.msra.mxu0 (!%p388_p2), %v2225_v26  ;;  %vm634_vm2 = vcmp.lt.s32.totalorder (!%p388_p2), %v2487_v25, 17  ;;  %s2321_s29 = smov (!%p388_p2), 96   ;;  %vm747_vm4 = vcmask (!%p388_p2), 1043456   ;;  %s2322_s15 = smov (!%p388_p2), 16   ;;  %v2234_v25 = vld [vmem:[%s2724_s5 + $0x10] sm:$0xff] (!%p388_p2)   ;;  %vm1874_vm5 = vcmask (!%p388_p2), 519168  }
   0xc   : > { %581 = vmatprep.subr.bf16.mxu0 (!%p388_p2), %v2226_v27  ;;  %v524_v62 = vrot.slane (!%p388_p2), %v519_v60, %v523_v59  ;;  %v2232_v59 = vld [vmem:[%s2724_s5 + $0x8] sm:$0xff] (!%p388_p2)   ;;  %s2323_s16 = smov (!%p388_p2), 80  }
   0xd   : > { %s2734_s26 = smov (!%p431_p3, %s1933_s26), 1 }
   0xe   : > { %s2203_s27 = smul.u32 12, %s2734_s26 }
   0xf   : > { %582 = vmatpush1.bf16.msra.mxu0 %v2228_v28 }
  0x10   : > { %s435_s30 = scalar_lea.vmem %s2719_s0, %s2203_s27  ;;  %583 = vmatprep.subr.bf16.mxu0 %v2229_v29  ;;  %s440_s17 = scalar_lea.vmem %s2732_s13, %s2203_s27 }
  0x11   : > { %v2008_v0 = vld [vmem:[%s435_s30] sm:$0xff]   ;;  %v444_v1 = vld [vmem:[%s435_s30 + $0x8] sm:$0xf] }
  0x12   : > { %v2410_v2 = vunpack.c.l.bf16 %v2008_v0  ;;  %v2412_v3 = vunpack.c.l.bf16 %v444_v1  ;;  %v2414_v4 = vunpack.c.h.bf16 %v2008_v0  ;;  %v2463_v0 = vrot.slane %v519_v60, %v527_v61 }
  0x13   : > { %584 = vmatpush1.bf16.msra.mxu0 %v2231_v30 }
  0x14   : > { %v451_v5 = vsel %vm450_vm0, %v2410_v2, 0.0  ;;  %v457_v6 = vsel %vm450_vm0, %v2412_v3, 0.0  ;;  %v454_v7 = vsel %vm450_vm0, %v2414_v4, 0.0 }
  0x15   : > { %452 = vadd.xlane.f32.xlu0 %v451_v5  ;;  %458 = vadd.xlane.f32.xlu1 %v457_v6 }
  0x19   : > { %455 = vadd.xlane.f32.xlu0 %v454_v7 }
  0xa2   : > { %v453_v8 = vpop.xlane.xlu0 %452  ;;  %v459_v9 = vpop.xlane.xlu1 %458 }
  0xa3   : > { %v461_v10 = vmul.f32 0.015625, %v453_v8  ;;  %v463_v11 = vmul.f32 0.015625, %v459_v9 }
  0xa5   : > { %v464_v12 = vsub.f32 %v2410_v2, %v461_v10  ;;  %v466_v13 = vsub.f32 %v2412_v3, %v463_v11 }
  0xa6   : > { %v456_v14 = vpop.xlane.xlu0 %455 }
  0xa7   : > { %v462_v15 = vmul.f32 0.015625, %v456_v14  ;;  %v467_v16 = vmul.f32 %v464_v12, %v464_v12  ;;  %v469_v17 = vmul.f32 %v466_v13, %v466_v13 }
  0xa9   : > { %v465_v18 = vsub.f32 %v2414_v4, %v462_v15  ;;  %v470_v19 = vsel %vm450_vm0, %v467_v16, 0.0  ;;  %v476_v20 = vsel %vm450_vm0, %v469_v17, 0.0 }
  0xaa   : > { %471 = vadd.xlane.f32.xlu1 %v470_v19 }
  0xab   : > { %v468_v21 = vmul.f32 %v465_v18, %v465_v18 }
  0xad   : > { %v473_v22 = vsel %vm450_vm0, %v468_v21, 0.0 }
  0xae   : > { %477 = vadd.xlane.f32.xlu1 %v476_v20  ;;  %474 = vadd.xlane.f32.xlu0 %v473_v22 }
 0x137   : > { %v472_v32 = vpop.xlane.xlu1 %471 }
 0x138   : > { %v479_v33 = vmul.f32 0.015625, %v472_v32 }
 0x13a   : > { %v482_v34 = vadd.f32 1e-05, %v479_v33 }
 0x13b   : > { %v478_v35 = vpop.xlane.xlu1 %477  ;;  %v475_v36 = vpop.xlane.xlu0 %474 }
 0x13c   : > { %2248 = vrsqrt.f32 %v482_v34  ;;  %v481_v37 = vmul.f32 0.015625, %v478_v35  ;;  %v480_v38 = vmul.f32 0.015625, %v475_v36 }
 0x13e   : > { %v484_v39 = vadd.f32 1e-05, %v481_v37  ;;  %v483_v40 = vadd.f32 1e-05, %v480_v38 }
 0x140   : > { %2250 = vrsqrt.f32 %v484_v39 }
 0x141   : > { %2252 = vrsqrt.f32 %v483_v40 }
 0x146   : > { %v2249_v41 = vpop.eup %2248 }
 0x147   : > { %v488_v42 = vmul.f32 %v2249_v41, %v464_v12 }
 0x149   : > { %v497_v47 = vmul.f32 %v1940_v43, %v488_v42 }
 0x14a   : > { %v2251_v44 = vpop.eup %2250 }
 0x14b   : > { %v2253_v45 = vpop.eup %2252  ;;  %v490_v50 = vmul.f32 %v2251_v44, %v466_v13  ;;  %v506_v51 = vadd.f32 %v1941_v48, %v497_v47 }
 0x14c   : > { %v489_v46 = vmul.f32 %v2253_v45, %v465_v18 }
 0x14d   : > { %v499_v54 = vmul.f32 %v1940_v43, %v490_v50 }
 0x14e   : > { %v498_v49 = vmul.f32 %v1940_v43, %v489_v46 }
 0x14f   : > { %v508_v55 = vadd.f32 %v1941_v48, %v499_v54 }
 0x150   : > { %v507_v52 = vadd.f32 %v1941_v48, %v498_v49 }
 0x151   : > { %v510_v56 = vpack.c.bf16 %v508_v55, %v508_v55 }
 0x152   : > { %v509_v53 = vpack.c.bf16 %v507_v52, %v506_v51 }
 0x154   : > { %1950 = vmatmul.mubr.msk.bf16.vlgmr.msra.gmra.mrb[0].mxu0 %vm450_vm0, %v509_v53 }
 0x155   : > { %619 = vmatprep.mubr.bf16.mxu0 %v2316_v31 }
 0x15c   : > { %1951 = vmatmul.mubr.msk.bf16.gmra.mrb[4].mxu0 %vm450_vm0, %v510_v56 }
 0x227   : > { %v611_v63 = vpop.f32.mrb[0].mxu0 }
 0x228   : > { %v613_v1 = vpop.f32.mrb[1].mxu0  ;;  %v612_v6 = vadd.f32 %v611_v63, %v524_v62 }
 0x229   : > { %v615_v5 = vpop.f32.mrb[2].mxu0  ;;  %v614_v9 = vadd.f32 %v613_v1, %v2463_v0 }
 0x22a   : > { %v616_v7 = vadd.f32 %v615_v5, %v524_v62  ;;  %v617_v8 = vpop.f32.mrb[3].mxu0 }
 0x22b   : > { %v618_v10 = vadd.f32 %v617_v8, %v2463_v0 }
 0x22c   : > { %v2467_v11 = vpack.c.bf16 %v616_v7, %v612_v6 }
 0x22d   : > { %v2469_v12 = vpack.c.bf16 %v618_v10, %v614_v9 }
 0x22e   : > { %807 = vrot.lane.b32.xlu0 %v2467_v11, %s2317_s22  ;;  %2075 = vmatprep.mubr.msk.bf16.mxu1 %vm641_vm1, %v2467_v11 }
 0x22f   : > { %v621_v13 = vpop.f32.mrb[4].mxu0 }
 0x230   : > { %v622_v14 = vadd.f32 %v621_v13, %v524_v62  ;;  %v623_v15 = vpop.f32.mrb[5].mxu0 }
 0x231   : > { %v625_v16 = vpop.f32.mrb[6].mxu0  ;;  %v624_v51 = vadd.f32 %v623_v15, %v2463_v0 }
 0x232   : > { %v2474_v17 = vpack.c.bf16 %v622_v14, %v622_v14  ;;  %v626_v18 = vpop.f32.mrb[7].mxu0 }
 0x233   : > { %v2505_v52 = vpack.c.bf16 %v624_v51, %v624_v51 }
 0x234   : > { %809 = vrot.lane.b32.xlu1 %v2474_v17, %s2317_s22 }
 0x235   : > { %v749_v14 = vsel %vm747_vm4, %v2505_v52, 0 }
 0x238   : > { %803 = vrot.lane.b32.xlu1 %v2467_v11, %s2318_s23 }
 0x23c   : > { %805 = vrot.lane.b32.xlu1 %v2474_v17, %s2318_s23 }
 0x2a0   : > { %v808_v19 = vpop.permute.xlu0 %807 }
 0x2a1   : > { %v818_v20 = vsel %vm641_vm1, %v808_v19, 0  ;;  %2194 = vmatprep.subr.msk.bf16.mxu0 %vm641_vm1, %v808_v19 }
 0x2a2   : > { %2088 = vmatpush3.bf16.xpose.msra.mxu0 %v818_v20 }
 0x2a6   : > { %v810_v21 = vpop.permute.xlu1 %809 }
 0x2a7   : > { %2195 = vmatprep.subr.msk.bf16.mxu0 %vm641_vm1, %v810_v21  ;;  %v821_v22 = vsel %vm641_vm1, %v810_v21, 0 }
 0x2aa   : > { %v804_v23 = vpop.permute.xlu1 %803  ;;  %2090 = vmatpush3.bf16.xpose.msra.mxu0 %v821_v22 }
 0x2ab   : > { %2091 = vmatprep.mubr.msk.bf16.mxu0 %vm641_vm1, %v804_v23 }
 0x2ae   : > { %v806_v24 = vpop.permute.xlu1 %805 }
 0x2b1   : > { %2092 = vmatmul.mubr.msk.bf16.vlgmr.msra.gmra.mrb[8].mxu0 %vm641_vm1, %v806_v24 }
 0x384   : > { %v2093_v26 = vpop.f32.mrb[8].mxu0 }
 0x385   : > { %v857_v27 = vpop.f32.mrb[9].mxu0  ;;  %v873_v32 = vsel %vm634_vm2, %v2093_v26, -1e+30 }
 0x386   : > { %v871_v28 = vsel %vm634_vm2, %v857_v27, -1e+30  ;;  %v2094_v29 = vpop.f32.mrb[10].mxu0  ;;  %v880_v35 = vsel %vm705_vm3, %v873_v32, -inf }
 0x387   : > { %v860_v30 = vpop.f32.mrb[11].mxu0  ;;  %v874_v31 = vsel %vm705_vm3, %v871_v28, -inf }
 0x388   : > { %v872_v33 = vsel %vm634_vm2, %v860_v30, -1e+30  ;;  %875 = vmax.xlane.f32.xlu0 %v874_v31 }
 0x389   : > { %v877_v34 = vsel %vm705_vm3, %v872_v33, -inf }
 0x38a   : > { %878 = vmax.xlane.f32.xlu1 %v877_v34 }
 0x38c   : > { %881 = vmax.xlane.f32.xlu0 %v880_v35 }
 0x415   : > { %v876_v36 = vpop.xlane.xlu0 %875 }
 0x416   : > { %v883_v37 = vsub.f32 %v871_v28, %v876_v36 }
 0x417   : > { %v879_v38 = vpop.xlane.xlu1 %878 }
 0x418   : > { %v886_v39 = vmul.f32 1.442695, %v883_v37  ;;  %v884_v40 = vsub.f32 %v872_v33, %v879_v38 }
 0x419   : > { %v882_v41 = vpop.xlane.xlu0 %881 }
 0x41a   : > { %2254 = vpow2.f32 %v886_v39  ;;  %v888_v42 = vmul.f32 1.442695, %v884_v40  ;;  %v885_v43 = vsub.f32 %v873_v32, %v882_v41 }
 0x41c   : > { %2256 = vpow2.f32 %v888_v42  ;;  %v890_v44 = vmul.f32 1.442695, %v885_v43 }
 0x41e   : > { %2258 = vpow2.f32 %v890_v44 }
 0x424   : > { %v2255_v45 = vpop.eup %2254 }
 0x425   : > { %v892_v46 = vsel %vm705_vm3, %v2255_v45, 0.0 }
 0x426   : > { %v2257_v47 = vpop.eup %2256  ;;  %893 = vadd.xlane.f32.xlu0 %v892_v46 }
 0x427   : > { %v895_v50 = vsel %vm705_vm3, %v2257_v47, 0.0 }
 0x428   : > { %v2259_v48 = vpop.eup %2258 }
 0x429   : > { %v898_v49 = vsel %vm705_vm3, %v2259_v48, 0.0 }
 0x42a   : > { %899 = vadd.xlane.f32.xlu1 %v898_v49  ;;  %896 = vadd.xlane.f32.xlu0 %v895_v50 }
 0x43b   : > { %911 = vrot.lane.b32.xlu1 %v2469_v12, %s2318_s23 }
 0x43f   : > { %913 = vrot.lane.b32.xlu1 %v2505_v52, %s2318_s23 }
 0x440   : > { %637 = vrot.lane.b32.xlu0 %v2467_v11, %s2319_s24 }
 0x443   : > { %639 = vrot.lane.b32.xlu1 %v2474_v17, %s2319_s24 }
 0x444   : > { %1101 = vrot.lane.b32.xlu0 %v2467_v11, %s2320_s28 }
 0x447   : > { %1103 = vrot.lane.b32.xlu1 %v2474_v17, %s2320_s28 }
 0x448   : > { %1097 = vrot.lane.b32.xlu0 %v2467_v11, %s2321_s29 }
 0x44b   : > { %1099 = vrot.lane.b32.xlu1 %v2474_v17, %s2321_s29 }
 0x4b3   : > { %v894_v53 = vpop.xlane.xlu0 %893 }
 0x4b4   : > { %2260 = vrcp.f32 %v894_v53 }
 0x4b7   : > { %v897_v54 = vpop.xlane.xlu0 %896  ;;  %v900_v55 = vpop.xlane.xlu1 %899 }
 0x4b8   : > { %2262 = vrcp.f32 %v897_v54 }
 0x4b9   : > { %2264 = vrcp.f32 %v900_v55 }
 0x4bb   : > { %v638_v56 = vpop.permute.xlu0 %637  ;;  %v912_v57 = vpop.permute.xlu1 %911 }
 0x4bc   : > { %2191 = vmatprep.subr.msk.bf16.mxu1 %vm641_vm1, %v638_v56  ;;  %2095 = vmatprep.subr.bf16.mxu0 %v912_v57  ;;  %v649_v58 = vsel %vm641_vm1, %v638_v56, 0 }
 0x4bd   : > { %2072 = vmatpush3.bf16.xpose.msra.mxu1 %v649_v58  ;;  %2096 = vmatpush3.bf16.msra.mxu0 %v912_v57 }
 0x4be   : > { %v2261_v61 = vpop.eup %2260 }
 0x4bf   : > { %v914_v60 = vpop.permute.xlu1 %913  ;;  %v904_v5 = vmul.f32 %v2261_v61, %v2255_v45  ;;  %v1102_v13 = vpop.permute.xlu0 %1101 }
 0x4c0   : > { %v923_v62 = vsel %vm747_vm4, %v914_v60, 0  ;;  %2196 = vmatprep.subr.msk.bf16.mxu0 %vm747_vm4, %v914_v60  ;;  %v1112_v27 = vsel %vm641_vm1, %v1102_v13, 0 }
 0x4c1   : > { %2098 = vmatpush3.bf16.msra.mxu0 %v923_v62 }
 0x4c2   : > { %v2263_v63 = vpop.eup %2262  ;;  %2103 = vmatprep.subr.bf16.mxu0 %v2232_v59 }
 0x4c3   : > { %v2265_v0 = vpop.eup %2264  ;;  %v640_v1 = vpop.permute.xlu1 %639  ;;  %v905_v6 = vmul.f32 %v2263_v63, %v2257_v47 }
 0x4c4   : > { %v906_v7 = vmul.f32 %v2265_v0, %v2259_v48  ;;  %2192 = vmatprep.subr.msk.bf16.mxu1 %vm641_vm1, %v640_v1  ;;  %v652_v8 = vsel %vm641_vm1, %v640_v1, 0  ;;  %v1098_v28 = vpop.permute.xlu0 %1097 }
 0x4c5   : > { %2074 = vmatpush3.bf16.xpose.msra.mxu1 %v652_v8  ;;  %v907_v9 = vpack.c.bf16 %v905_v6, %v904_v5 }
 0x4c6   : > { %2079 = vmatprep.subr.bf16.mxu1 %v2469_v12  ;;  %v908_v10 = vpack.c.bf16 %v906_v7, %v906_v7 }
 0x4c7   : > { %2099 = vmatprep.mubr.msk.bf16.mxu0 %vm705_vm3, %v907_v9  ;;  %v1104_v31 = vpop.permute.xlu1 %1103 }
 0x4c8   : > { %2100 = vmatmul.mubr.msk.bf16.vlgmr.msra.gmra.mrb[12].mxu0 %vm705_vm3, %v908_v10  ;;  %v1115_v36 = vsel %vm641_vm1, %v1104_v31, 0 }
 0x4c9   : > { %2104 = vmatpush3.bf16.msra.mxu0 %v2232_v59 }
 0x4ca   : > { %2197 = vmatprep.subr.msk.bf16.mxu0 %vm641_vm1, %v1102_v13 }
 0x4cb   : > { %v1100_v37 = vpop.permute.xlu1 %1099 }
 0x4cc   : > { %2076 = vmatmul.mubr.msk.bf16.vlgmr.msra.gmra.mrb[0].mxu1 %vm641_vm1, %v2474_v17 }
 0x4cd   : > { %2080 = vmatpush3.bf16.msra.mxu1 %v2469_v12 }
 0x4ce   : > { %2193 = vmatprep.subr.msk.bf16.mxu1 %vm747_vm4, %v2505_v52 }
 0x4d1   : > { %2082 = vmatpush3.bf16.msra.mxu1 %v749_v14 }
 0x59b   : > { %v2101_v15 = vpop.f32.mrb[12].mxu0 }
 0x59c   : > { %v959_v16 = vpop.f32.mrb[13].mxu0  ;;  %v974_v22 = vpack.c.bf16 %v2101_v15, %v2101_v15 }
 0x59d   : > { %v2102_v18 = vpop.f32.mrb[14].mxu0 }
 0x59e   : > { %v962_v19 = vpop.f32.mrb[15].mxu0 }
 0x59f   : > { %v973_v20 = vpack.c.bf16 %v962_v19, %v959_v16  ;;  %v2077_v21 = vpop.f32.mrb[0].mxu1 }
 0x5a0   : > { %v688_v23 = vpop.f32.mrb[1].mxu1  ;;  %v704_v33 = vsel %vm634_vm2, %v2077_v21, -1e+30 }
 0x5a1   : > { %v702_v24 = vsel %vm634_vm2, %v688_v23, -1e+30  ;;  %v2078_v26 = vpop.f32.mrb[2].mxu1  ;;  %2105 = vmatprep.mubr.msk.bf16.mxu0 %vm641_vm1, %v973_v20  ;;  %v712_v35 = vsel %vm705_vm3, %v704_v33, -inf }
 0x5a2   : > { %v691_v29 = vpop.f32.mrb[3].mxu1  ;;  %2106 = vmatmul.mubr.msk.bf16.vlgmr.msra.gmra.mrb[16].mxu0 %vm641_vm1, %v974_v22  ;;  %v706_v30 = vsel %vm705_vm3, %v702_v24, -inf }
 0x5a3   : > { %v703_v32 = vsel %vm634_vm2, %v691_v29, -1e+30  ;;  %2116 = vmatpush3.bf16.xpose.msra.mxu0 %v1112_v27  ;;  %2119 = vmatprep.mubr.msk.bf16.mxu0 %vm641_vm1, %v1098_v28 }
 0x5a4   : > { %2198 = vmatprep.subr.msk.bf16.mxu0 %vm641_vm1, %v1104_v31  ;;  %707 = vmax.xlane.f32.xlu0 %v706_v30  ;;  %v709_v34 = vsel %vm705_vm3, %v703_v32, -inf }
 0x5a5   : > { %710 = vmax.xlane.f32.xlu1 %v709_v34 }
 0x5a8   : > { %713 = vmax.xlane.f32.xlu0 %v712_v35 }
 0x5ab   : > { %2118 = vmatpush3.bf16.xpose.msra.mxu0 %v1115_v36 }
 0x5b2   : > { %2120 = vmatmul.mubr.msk.bf16.vlgmr.msra.gmra.mrb[20].mxu0 %vm641_vm1, %v1100_v37 }
 0x631   : > { %v708_v38 = vpop.xlane.xlu0 %707 }
 0x632   : > { %v715_v39 = vsub.f32 %v702_v24, %v708_v38  ;;  %v711_v40 = vpop.xlane.xlu1 %710 }
 0x633   : > { %v716_v41 = vsub.f32 %v703_v32, %v711_v40 }
 0x634   : > { %v718_v42 = vmul.f32 1.442695, %v715_v39 }
 0x635   : > { %v720_v43 = vmul.f32 1.442695, %v716_v41  ;;  %v714_v44 = vpop.xlane.xlu0 %713  ;;  %v2233_v41 = vld [vmem:[%s2724_s5] sm:$0xff]  }
 0x636   : > { %2266 = vpow2.f32 %v718_v42  ;;  %v717_v45 = vsub.f32 %v704_v33, %v714_v44  ;;  %2109 = vmatprep.subr.bf16.mxu1 %v2233_v41 }
 0x637   : > { %2268 = vpow2.f32 %v720_v43 }
 0x638   : > { %v722_v46 = vmul.f32 1.442695, %v717_v45 }
 0x63a   : > { %2270 = vpow2.f32 %v722_v46 }
 0x640   : > { %v2267_v47 = vpop.eup %2266 }
 0x641   : > { %v724_v48 = vsel %vm705_vm3, %v2267_v47, 0.0  ;;  %v2269_v49 = vpop.eup %2268 }
 0x642   : > { %725 = vadd.xlane.f32.xlu0 %v724_v48  ;;  %v727_v53 = vsel %vm705_vm3, %v2269_v49, 0.0 }
 0x644   : > { %v2271_v50 = vpop.eup %2270 }
 0x645   : > { %v730_v51 = vsel %vm705_vm3, %v2271_v50, 0.0 }
 0x646   : > { %731 = vadd.xlane.f32.xlu1 %v730_v51  ;;  %728 = vadd.xlane.f32.xlu0 %v727_v53 }
 0x657   : > { %1338 = vrot.lane.b32.xlu1 %v2474_v17, %s2322_s15 }
 0x65b   : > { %1332 = vrot.lane.b32.xlu1 %v2467_v11, %s2323_s16 }
 0x65c   : > { %1336 = vrot.lane.b32.xlu0 %v2467_v11, %s2322_s15 }
 0x65f   : > { %1334 = vrot.lane.b32.xlu1 %v2474_v17, %s2323_s16 }
 0x675   : > { %v2562_v54 = vpop.f32.mrb[16].mxu0 }
 0x676   : > { %v2564_v55 = vpop.f32.mrb[17].mxu0 }
 0x677   : > { %v2108_v56 = vpop.f32.mrb[18].mxu0 }
 0x678   : > { %v2566_v57 = vpop.f32.mrb[19].mxu0 }
 0x685   : > { %v2121_v58 = vpop.f32.mrb[20].mxu0 }
 0x686   : > { %v1151_v59 = vpop.f32.mrb[21].mxu0  ;;  %v1167_v11 = vsel %vm634_vm2, %v2121_v58, -1e+30 }
 0x687   : > { %v1165_v60 = vsel %vm634_vm2, %v1151_v59, -1e+30  ;;  %v2122_v61 = vpop.f32.mrb[22].mxu0  ;;  %v1174_v1 = vsel %vm705_vm3, %v1167_v11, -inf }
 0x688   : > { %v1154_v62 = vpop.f32.mrb[23].mxu0  ;;  %v1168_v63 = vsel %vm705_vm3, %v1165_v60, -inf }
 0x689   : > { %v1166_v17 = vsel %vm634_vm2, %v1154_v62, -1e+30  ;;  %1169 = vmax.xlane.f32.xlu0 %v1168_v63 }
 0x68a   : > { %v1171_v0 = vsel %vm705_vm3, %v1166_v17, -inf }
 0x68b   : > { %1172 = vmax.xlane.f32.xlu1 %v1171_v0 }
 0x68d   : > { %1175 = vmax.xlane.f32.xlu0 %v1174_v1 }
 0x6cf   : > { %v726_v5 = vpop.xlane.xlu0 %725 }
 0x6d0   : > { %2272 = vrcp.f32 %v726_v5 }
 0x6d3   : > { %v729_v6 = vpop.xlane.xlu0 %728  ;;  %v732_v7 = vpop.xlane.xlu1 %731 }
 0x6d4   : > { %2274 = vrcp.f32 %v729_v6 }
 0x6d5   : > { %2276 = vrcp.f32 %v732_v7 }
 0x6d7   : > { %v1337_v8 = vpop.permute.xlu0 %1336  ;;  %v1339_v9 = vpop.permute.xlu1 %1338 }
 0x6d8   : > { %v1347_v10 = vsel %vm641_vm1, %v1337_v8, 0  ;;  %2200 = vmatprep.subr.msk.bf16.mxu0 %vm641_vm1, %v1337_v8  ;;  %v1350_v21 = vsel %vm641_vm1, %v1339_v9, 0 }
 0x6d9   : > { %2138 = vmatpush3.bf16.xpose.msra.mxu0 %v1347_v10 }
 0x6da   : > { %2201 = vmatprep.subr.msk.bf16.mxu0 %vm641_vm1, %v1339_v9  ;;  %v2273_v14 = vpop.eup %2272 }
 0x6db   : > { %v1333_v13 = vpop.permute.xlu1 %1332  ;;  %v736_v18 = vmul.f32 %v2273_v14, %v2267_v47 }
 0x6dc   : > { %2141 = vmatprep.mubr.msk.bf16.mxu0 %vm641_vm1, %v1333_v13 }
 0x6de   : > { %v2275_v15 = vpop.eup %2274 }
 0x6df   : > { %v2277_v16 = vpop.eup %2276  ;;  %v737_v19 = vmul.f32 %v2275_v15, %v2269_v49  ;;  %v1335_v24 = vpop.permute.xlu1 %1334 }
 0x6e0   : > { %v738_v20 = vmul.f32 %v2277_v16, %v2271_v50 }
 0x6e1   : > { %2140 = vmatpush3.bf16.xpose.msra.mxu0 %v1350_v21  ;;  %v739_v22 = vpack.c.bf16 %v737_v19, %v736_v18 }
 0x6e2   : > { %v740_v23 = vpack.c.bf16 %v738_v20, %v738_v20 }
 0x6e3   : > { %2083 = vmatprep.mubr.msk.bf16.mxu1 %vm705_vm3, %v739_v22 }
 0x6e4   : > { %2084 = vmatmul.mubr.msk.bf16.vlgmr.msra.gmra.mrb[4].mxu1 %vm705_vm3, %v740_v23 }
 0x6e5   : > { %2110 = vmatpush3.bf16.msra.mxu1 %v2233_v41 }
 0x6e8   : > { %2142 = vmatmul.mubr.msk.bf16.vlgmr.msra.gmra.mrb[24].mxu0 %vm641_vm1, %v1335_v24 }
 0x716   : > { %v1170_v26 = vpop.xlane.xlu0 %1169 }
 0x717   : > { %v1177_v27 = vsub.f32 %v1165_v60, %v1170_v26 }
 0x718   : > { %v1173_v28 = vpop.xlane.xlu1 %1172 }
 0x719   : > { %v1180_v29 = vmul.f32 1.442695, %v1177_v27  ;;  %v1178_v30 = vsub.f32 %v1166_v17, %v1173_v28 }
 0x71a   : > { %v1176_v31 = vpop.xlane.xlu0 %1175 }
 0x71b   : > { %2278 = vpow2.f32 %v1180_v29  ;;  %v1182_v32 = vmul.f32 1.442695, %v1178_v30  ;;  %v1179_v33 = vsub.f32 %v1167_v11, %v1176_v31 }
 0x71d   : > { %2280 = vpow2.f32 %v1182_v32  ;;  %v1184_v34 = vmul.f32 1.442695, %v1179_v33 }
 0x71f   : > { %2282 = vpow2.f32 %v1184_v34 }
 0x725   : > { %v2279_v35 = vpop.eup %2278 }
 0x726   : > { %v1186_v36 = vsel %vm705_vm3, %v2279_v35, 0.0 }
 0x727   : > { %v2281_v37 = vpop.eup %2280  ;;  %1187 = vadd.xlane.f32.xlu0 %v1186_v36 }
 0x728   : > { %v1189_v40 = vsel %vm705_vm3, %v2281_v37, 0.0 }
 0x729   : > { %v2283_v38 = vpop.eup %2282 }
 0x72a   : > { %v1192_v39 = vsel %vm705_vm3, %v2283_v38, 0.0 }
 0x72b   : > { %1193 = vadd.xlane.f32.xlu1 %v1192_v39  ;;  %1190 = vadd.xlane.f32.xlu0 %v1189_v40 }
 0x73c   : > { %1205 = vrot.lane.b32.xlu1 %v2505_v52, %s2321_s29 }
 0x741   : > { %1203 = vrot.lane.b32.xlu0 %v2469_v12, %s2321_s29 }
 0x7b4   : > { %v1188_v42 = vpop.xlane.xlu0 %1187 }
 0x7b5   : > { %2284 = vrcp.f32 %v1188_v42 }
 0x7b7   : > { %v2085_v43 = vpop.f32.mrb[4].mxu1 }
 0x7b8   : > { %v785_v44 = vpop.f32.mrb[5].mxu1  ;;  %v1191_v45 = vpop.xlane.xlu0 %1190  ;;  %v800_v51 = vpack.c.bf16 %v2085_v43, %v2085_v43 }
 0x7b9   : > { %2286 = vrcp.f32 %v1191_v45  ;;  %v1194_v46 = vpop.xlane.xlu1 %1193  ;;  %v2086_v47 = vpop.f32.mrb[6].mxu1 }
 0x7ba   : > { %2288 = vrcp.f32 %v1194_v46  ;;  %v788_v48 = vpop.f32.mrb[7].mxu1  ;;  %v2235_v46 = vld [vmem:[%s2724_s5 + $0x18] sm:$0xff]  }
 0x7bb   : > { %v799_v49 = vpack.c.bf16 %v788_v48, %v785_v44  ;;  %v2143_v50 = vpop.f32.mrb[24].mxu0 }
 0x7bc   : > { %v1386_v53 = vpop.f32.mrb[25].mxu0  ;;  %v1204_v56 = vpop.permute.xlu0 %1203  ;;  %v1402_v0 = vsel %vm634_vm2, %v2143_v50, -1e+30 }
 0x7bd   : > { %v1400_v58 = vsel %vm634_vm2, %v1386_v53, -1e+30  ;;  %2111 = vmatprep.mubr.msk.bf16.mxu1 %vm641_vm1, %v799_v49  ;;  %2123 = vmatprep.subr.bf16.mxu1 %v1204_v56  ;;  %v2144_v59 = vpop.f32.mrb[26].mxu0  ;;  %v1206_v62 = vpop.permute.xlu1 %1205  ;;  %v1409_v7 = vsel %vm705_vm3, %v1402_v0, -inf }
 0x7be   : > { %2112 = vmatmul.mubr.msk.bf16.vlgmr.msra.gmra.mrb[8].mxu1 %vm641_vm1, %v800_v51  ;;  %v1389_v60 = vpop.f32.mrb[27].mxu0  ;;  %v1403_v61 = vsel %vm705_vm3, %v1400_v58, -inf  ;;  %v1215_v1 = vsel %vm747_vm4, %v1206_v62, 0 }
 0x7bf   : > { %2124 = vmatpush3.bf16.msra.mxu1 %v1204_v56  ;;  %v1401_v63 = vsel %vm634_vm2, %v1389_v60, -1e+30  ;;  %1404 = vmax.xlane.f32.xlu1 %v1403_v61  ;;  %v2285_v17 = vpop.eup %2284 }
 0x7c0   : > { %2199 = vmatprep.subr.msk.bf16.mxu1 %vm747_vm4, %v1206_v62  ;;  %v1406_v11 = vsel %vm705_vm3, %v1401_v63, -inf  ;;  %v1198_v8 = vmul.f32 %v2285_v17, %v2279_v35 }
 0x7c1   : > { %1407 = vmax.xlane.f32.xlu0 %v1406_v11 }
 0x7c3   : > { %v2287_v5 = vpop.eup %2286  ;;  %2126 = vmatpush3.bf16.msra.mxu1 %v1215_v1 }
 0x7c4   : > { %v2289_v6 = vpop.eup %2288  ;;  %v1199_v9 = vmul.f32 %v2287_v5, %v2281_v37  ;;  %2131 = vmatprep.subr.bf16.mxu1 %v2234_v25 }
 0x7c5   : > { %v1200_v10 = vmul.f32 %v2289_v6, %v2283_v38  ;;  %1410 = vmax.xlane.f32.xlu0 %v1409_v7 }
 0x7c6   : > { %v1201_v13 = vpack.c.bf16 %v1199_v9, %v1198_v8 }
 0x7c7   : > { %v1202_v14 = vpack.c.bf16 %v1200_v10, %v1200_v10 }
 0x7c8   : > { %2127 = vmatprep.mubr.msk.bf16.mxu1 %vm705_vm3, %v1201_v13 }
 0x7c9   : > { %2128 = vmatmul.mubr.msk.bf16.vlgmr.msra.gmra.mrb[12].mxu1 %vm705_vm3, %v1202_v14 }
 0x7ca   : > { %2132 = vmatpush3.bf16.msra.mxu1 %v2234_v25 }
 0x84c   : > { %v1405_v15 = vpop.xlane.xlu1 %1404 }
 0x84d   : > { %v1412_v19 = vsub.f32 %v1400_v58, %v1405_v15  ;;  %v1980_v15 = vld [vmem:[%s2725_s6] ss:$0 sm:$0xff] }
 0x84e   : > { %v1408_v16 = vpop.xlane.xlu0 %1407 }
 0x84f   : > { %v1413_v18 = vsub.f32 %v1401_v63, %v1408_v16  ;;  %v1415_v23 = vmul.f32 1.442695, %v1412_v19 }
 0x851   : > { %v1417_v20 = vmul.f32 1.442695, %v1413_v18 }
 0x852   : > { %v1411_v21 = vpop.xlane.xlu0 %1410 }
 0x853   : > { %2290 = vpow2.f32 %v1417_v20  ;;  %v1414_v22 = vsub.f32 %v1402_v0, %v1411_v21 }
 0x855   : > { %v1419_v24 = vmul.f32 1.442695, %v1414_v22 }
 0x857   : > { %2292 = vpow2.f32 %v1419_v24 }
 0x858   : > { %2294 = vpow2.f32 %v1415_v23 }
 0x85d   : > { %v2291_v26 = vpop.eup %2290 }
 0x85e   : > { %v1424_v27 = vsel %vm705_vm3, %v2291_v26, 0.0 }
 0x85f   : > { %1425 = vadd.xlane.f32.xlu0 %v1424_v27 }
 0x861   : > { %v2293_v28 = vpop.eup %2292 }
 0x862   : > { %v1427_v29 = vsel %vm705_vm3, %v2293_v28, 0.0  ;;  %v2295_v30 = vpop.eup %2294 }
 0x863   : > { %1428 = vadd.xlane.f32.xlu1 %v1427_v29  ;;  %v1421_v31 = vsel %vm705_vm3, %v2295_v30, 0.0 }
 0x867   : > { %1422 = vadd.xlane.f32.xlu1 %v1421_v31 }
 0x875   : > { %1438 = vrot.lane.b32.xlu0 %v2469_v12, %s2323_s16 }
 0x878   : > { %1440 = vrot.lane.b32.xlu1 %v2505_v52, %s2323_s16 }
 0x891   : > { %v2113_v32 = vpop.f32.mrb[8].mxu1 }
 0x892   : > { %v1092_v33 = vadd.f32 %v2113_v32, %v2562_v54  ;;  %v1083_v34 = vpop.f32.mrb[9].mxu1 }
 0x893   : > { %v1084_v35 = vadd.f32 %v1083_v34, %v2564_v55  ;;  %v2114_v36 = vpop.f32.mrb[10].mxu1 }
 0x894   : > { %v1086_v37 = vpop.f32.mrb[11].mxu1 }
 0x895   : > { %v1087_v38 = vadd.f32 %v1086_v37, %v2566_v57 }
 0x89c   : > { %v2129_v39 = vpop.f32.mrb[12].mxu1 }
 0x89d   : > { %v1251_v40 = vpop.f32.mrb[13].mxu1  ;;  %v1266_v44 = vpack.c.bf16 %v2129_v39, %v2129_v39 }
 0x89e   : > { %v2130_v41 = vpop.f32.mrb[14].mxu1 }
 0x89f   : > { %v1254_v42 = vpop.f32.mrb[15].mxu1  ;;  %v2236_v41 = vld [vmem:[%s2728_s9] sm:$0xff]  }
 0x8a0   : > { %v1265_v43 = vpack.c.bf16 %v1254_v42, %v1251_v40  ;;  %2159 = vmatprep.subr.bf16.mxu0 %v2236_v41  ;;  %v2237_v42 = vld [vmem:[%s2728_s9 + $0x8] sm:$0xff]  }
 0x8a1   : > { %2160 = vmatpush3.bf16.msra.mxu0 %v2236_v41 }
 0x8a2   : > { %2133 = vmatprep.mubr.msk.bf16.mxu1 %vm641_vm1, %v1265_v43  ;;  %2161 = vmatprep.subr.bf16.mxu0 %v2237_v42  ;;  %v2238_v43 = vld [vmem:[%s2728_s9 + $0x10] sm:$0xff]  }
 0x8a3   : > { %2134 = vmatmul.mubr.msk.bf16.vlgmr.msra.gmra.mrb[16].mxu1 %vm641_vm1, %v1266_v44  ;;  %v2239_v44 = vld [vmem:[%s2728_s9 + $0x18] sm:$0xff]  }
 0x8a5   : > { %2162 = vmatpush3.bf16.msra.mxu0 %v2237_v42 }
 0x8a6   : > { %2163 = vmatprep.subr.bf16.mxu0 %v2238_v43 }
 0x8a9   : > { %2164 = vmatpush3.bf16.msra.mxu0 %v2238_v43 }
 0x8aa   : > { %2165 = vmatprep.subr.bf16.mxu0 %v2239_v44 }
 0x8ad   : > { %2166 = vmatpush3.bf16.msra.mxu0 %v2239_v44 }
 0x8ec   : > { %v1426_v12 = vpop.xlane.xlu0 %1425 }
 0x8f0   : > { %v1439_v52 = vpop.permute.xlu0 %1438  ;;  %v1429_v54 = vpop.xlane.xlu1 %1428 }
 0x8f1   : > { %2145 = vmatprep.subr.bf16.mxu1 %v1439_v52  ;;  %2296 = vrcp.f32 %v1429_v54  ;;  %v2242_v54 = vld [vmem:[%s2730_s11 + $0x10] sm:$0xff]  }
 0x8f2   : > { %2146 = vmatpush3.bf16.msra.mxu1 %v1439_v52  ;;  %2298 = vrcp.f32 %v1426_v12  ;;  %v2240_v12 = vld [vmem:[%s2730_s11] sm:$0xff]   ;;  %v2241_v52 = vld [vmem:[%s2730_s11 + $0x8] sm:$0xff]  }
 0x8f4   : > { %v1423_v55 = vpop.xlane.xlu1 %1422 }
 0x8f5   : > { %2300 = vrcp.f32 %v1423_v55  ;;  %v2243_v55 = vld [vmem:[%s2730_s11 + $0x18] sm:$0xff]  }
 0x8f8   : > { %v1441_v57 = vpop.permute.xlu1 %1440 }
 0x8f9   : > { %v1450_v45 = vsel %vm747_vm4, %v1441_v57, 0  ;;  %2202 = vmatprep.subr.msk.bf16.mxu1 %vm747_vm4, %v1441_v57  ;;  %v2244_v57 = vld [vmem:[%s2730_s11 + $0x20] sm:$0xff]  }
 0x8fa   : > { %2148 = vmatpush3.bf16.msra.mxu1 %v1450_v45  ;;  %v2245_v45 = vld [vmem:[%s2730_s11 + $0x28] sm:$0xff]  }
 0x8fb   : > { %v2297_v47 = vpop.eup %2296  ;;  %2153 = vmatprep.subr.bf16.mxu1 %v2235_v46 }
 0x8fc   : > { %v2299_v48 = vpop.eup %2298  ;;  %v1435_v50 = vmul.f32 %v2297_v47, %v2293_v28 }
 0x8fd   : > { %v1434_v53 = vmul.f32 %v2299_v48, %v2291_v26 }
 0x8fe   : > { %v1437_v58 = vpack.c.bf16 %v1435_v50, %v1435_v50 }
 0x8ff   : > { %v2301_v49 = vpop.eup %2300 }
 0x900   : > { %v1433_v51 = vmul.f32 %v2301_v49, %v2295_v30 }
 0x902   : > { %v1436_v56 = vpack.c.bf16 %v1434_v53, %v1433_v51 }
 0x904   : > { %2149 = vmatprep.mubr.msk.bf16.mxu1 %vm705_vm3, %v1436_v56 }
 0x905   : > { %2150 = vmatmul.mubr.msk.bf16.vlgmr.msra.gmra.mrb[20].mxu1 %vm705_vm3, %v1437_v58 }
 0x906   : > { %2154 = vmatpush3.bf16.msra.mxu1 %v2235_v46 }
 0x907   : > { %2171 = vmatprep.subr.bf16.mxu1 %v2240_v12 }
 0x976   : > { %v2135_v59 = vpop.f32.mrb[16].mxu1 }
 0x977   : > { %v1331_v60 = vadd.f32 %v2135_v59, %v1092_v33  ;;  %v1315_v61 = vpop.f32.mrb[17].mxu1 }
 0x978   : > { %v1329_v62 = vadd.f32 %v1315_v61, %v1084_v35  ;;  %v2136_v63 = vpop.f32.mrb[18].mxu1 }
 0x979   : > { %v1318_v11 = vpop.f32.mrb[19].mxu1 }
 0x97a   : > { %v1330_v17 = vadd.f32 %v1318_v11, %v1087_v38 }
 0x9d8   : > { %v2151_v0 = vpop.f32.mrb[20].mxu1 }
 0x9d9   : > { %v1486_v1 = vpop.f32.mrb[21].mxu1  ;;  %v1501_v8 = vpack.c.bf16 %v2151_v0, %v2151_v0 }
 0x9da   : > { %v2152_v5 = vpop.f32.mrb[22].mxu1 }
 0x9db   : > { %v1489_v6 = vpop.f32.mrb[23].mxu1 }
 0x9dc   : > { %v1500_v7 = vpack.c.bf16 %v1489_v6, %v1486_v1 }
 0x9de   : > { %2155 = vmatprep.mubr.msk.bf16.mxu1 %vm641_vm1, %v1500_v7 }
 0x9df   : > { %2156 = vmatmul.mubr.msk.bf16.vlgmr.msra.gmra.mrb[24].mxu1 %vm641_vm1, %v1501_v8 }
 0x9e0   : > { %2172 = vmatpush3.bf16.msra.mxu1 %v2240_v12 }
 0x9e1   : > { %2173 = vmatprep.subr.bf16.mxu1 %v2241_v52 }
 0x9e4   : > { %2174 = vmatpush3.bf16.msra.mxu1 %v2241_v52 }
 0x9e5   : > { %2175 = vmatprep.subr.bf16.mxu1 %v2242_v54 }
 0x9e8   : > { %2176 = vmatpush3.bf16.msra.mxu1 %v2242_v54 }
 0x9e9   : > { %2177 = vmatprep.subr.bf16.mxu1 %v2243_v55 }
 0x9ec   : > { %2178 = vmatpush3.bf16.msra.mxu1 %v2243_v55 }
 0x9ed   : > { %2179 = vmatprep.subr.bf16.mxu1 %v2244_v57 }
 0x9f0   : > { %2180 = vmatpush3.bf16.msra.mxu1 %v2244_v57 }
 0x9f1   : > { %2181 = vmatprep.subr.bf16.mxu1 %v2245_v45 }
 0x9f4   : > { %2182 = vmatpush3.bf16.msra.mxu1 %v2245_v45 }
 0xab2   : > { %v2157_v9 = vpop.f32.mrb[24].mxu1 }
 0xab3   : > { %v1566_v10 = vadd.f32 %v2157_v9, %v1331_v60  ;;  %v1550_v13 = vpop.f32.mrb[25].mxu1  ;;  %v1981_v60 = vld [vmem:[%s2726_s7] ss:$0 sm:$0xff] }
 0xab4   : > { %v1564_v14 = vadd.f32 %v1550_v13, %v1329_v62  ;;  %v2158_v25 = vpop.f32.mrb[26].mxu1 }
 0xab5   : > { %v1553_v16 = vpop.f32.mrb[27].mxu1  ;;  %v1569_v20 = vadd.f32 %v1566_v10, %v2412_v3  ;;  %v2247_v25 = vld [vmem:[%s2730_s11 + $0x38] sm:$0xff]  }
 0xab6   : > { %v1567_v18 = vadd.f32 %v2410_v2, %v1564_v14  ;;  %v1565_v19 = vadd.f32 %v1553_v16, %v1330_v17  ;;  %v1982_v17 = vld [vmem:[%s2727_s8] ss:$0 sm:$0xff]  ;;  %v2246_v14 = vld [vmem:[%s2730_s11 + $0x30] sm:$0xff]  }
 0xab7   : > { %v2646_v26 = vadd.f32 %v1980_v15, %v1569_v20  ;;  %2183 = vmatprep.subr.bf16.mxu1 %v2246_v14 }
 0xab8   : > { %v2639_v21 = vadd.f32 %v1980_v15, %v1567_v18  ;;  %v1568_v22 = vadd.f32 %v2414_v4, %v1565_v19  ;;  %2184 = vmatpush3.bf16.msra.mxu1 %v2246_v14 }
 0xab9   : > { %v1588_v2 = vsel %vm450_vm0, %v2646_v26, 0.0  ;;  %2185 = vmatprep.subr.bf16.mxu1 %v2247_v25 }
 0xaba   : > { %v2642_v23 = vadd.f32 %v1980_v15, %v1568_v22  ;;  %v1582_v24 = vsel %vm450_vm0, %v2639_v21, 0.0  ;;  %v1983_v15 = vld [vmem:[%s2729_s10] ss:$0 sm:$0xff] }
 0xabb   : > { %1583 = vadd.xlane.f32.xlu1 %v1582_v24 }
 0xabc   : > { %v1585_v27 = vsel %vm450_vm0, %v2642_v23, 0.0  ;;  %2186 = vmatpush3.bf16.msra.mxu1 %v2247_v25 }
 0xabd   : > { %1586 = vadd.xlane.f32.xlu0 %v1585_v27 }
 0xac1   : > { %1589 = vadd.xlane.f32.xlu0 %v1588_v2 }
 0xb48   : > { %v1584_v3 = vpop.xlane.xlu1 %1583 }
 0xb49   : > { %v1591_v28 = vmul.f32 0.015625, %v1584_v3 }
 0xb4a   : > { %v1587_v29 = vpop.xlane.xlu0 %1586 }
 0xb4b   : > { %v1594_v4 = vsub.f32 %v2639_v21, %v1591_v28  ;;  %v1592_v30 = vmul.f32 0.015625, %v1587_v29 }
 0xb4d   : > { %v1595_v31 = vsub.f32 %v2642_v23, %v1592_v30  ;;  %v1597_v32 = vmul.f32 %v1594_v4, %v1594_v4  ;;  %v1990_v30 = vld [vmem:[%s2731_s12] ss:$0 sm:$0xff] }
 0xb4e   : > { %v1590_v33 = vpop.xlane.xlu0 %1589 }
 0xb4f   : > { %v1593_v34 = vmul.f32 0.015625, %v1590_v33  ;;  %v1600_v35 = vsel %vm450_vm0, %v1597_v32, 0.0  ;;  %v1598_v36 = vmul.f32 %v1595_v31, %v1595_v31 }
 0xb50   : > { %1601 = vadd.xlane.f32.xlu1 %v1600_v35 }
 0xb51   : > { %v1596_v37 = vsub.f32 %v2646_v26, %v1593_v34  ;;  %v1603_v38 = vsel %vm450_vm0, %v1598_v36, 0.0 }
 0xb52   : > { %1604 = vadd.xlane.f32.xlu0 %v1603_v38 }
 0xb53   : > { %v1599_v39 = vmul.f32 %v1596_v37, %v1596_v37 }
 0xb55   : > { %v1606_v40 = vsel %vm450_vm0, %v1599_v39, 0.0 }
 0xb56   : > { %1607 = vadd.xlane.f32.xlu1 %v1606_v40 }
 0xbdd   : > { %v1602_v46 = vpop.xlane.xlu1 %1601 }
 0xbde   : > { %v1609_v47 = vmul.f32 0.015625, %v1602_v46 }
 0xbdf   : > { %v1605_v48 = vpop.xlane.xlu0 %1604 }
 0xbe0   : > { %v1612_v49 = vadd.f32 1e-05, %v1609_v47  ;;  %v1610_v50 = vmul.f32 0.015625, %v1605_v48 }
 0xbe2   : > { %2302 = vrsqrt.f32 %v1612_v49  ;;  %v1613_v51 = vadd.f32 1e-05, %v1610_v50 }
 0xbe3   : > { %v1608_v53 = vpop.xlane.xlu1 %1607 }
 0xbe4   : > { %2304 = vrsqrt.f32 %v1613_v51  ;;  %v1611_v56 = vmul.f32 0.015625, %v1608_v53 }
 0xbe6   : > { %v1614_v58 = vadd.f32 1e-05, %v1611_v56 }
 0xbe8   : > { %2306 = vrsqrt.f32 %v1614_v58 }
 0xbec   : > { %v2303_v59 = vpop.eup %2302 }
 0xbed   : > { %v1618_v61 = vmul.f32 %v2303_v59, %v1594_v4 }
 0xbee   : > { %v2305_v62 = vpop.eup %2304 }
 0xbef   : > { %v1619_v63 = vmul.f32 %v2305_v62, %v1595_v31  ;;  %v1627_v11 = vmul.f32 %v1981_v60, %v1618_v61 }
 0xbf1   : > { %v1628_v0 = vmul.f32 %v1981_v60, %v1619_v63  ;;  %v1636_v6 = vadd.f32 %v1982_v17, %v1627_v11 }
 0xbf2   : > { %v2307_v1 = vpop.eup %2306 }
 0xbf3   : > { %v1620_v5 = vmul.f32 %v2307_v1, %v1596_v37  ;;  %v1637_v7 = vadd.f32 %v1982_v17, %v1628_v0 }
 0xbf5   : > { %v1629_v8 = vmul.f32 %v1981_v60, %v1620_v5  ;;  %v1639_v9 = vpack.c.bf16 %v1637_v7, %v1636_v6 }
 0xbf7   : > { %2167 = vmatprep.mubr.msk.bf16.mxu0 %vm450_vm0, %v1639_v9  ;;  %v1638_v10 = vadd.f32 %v1982_v17, %v1629_v8 }
 0xbf9   : > { %v1640_v13 = vpack.c.bf16 %v1638_v10, %v1638_v10 }
 0xbfb   : > { %2168 = vmatmul.mubr.msk.bf16.vlgmr.msra.gmra.mrb[28].mxu0 %vm450_vm0, %v1640_v13 }
 0xcce   : > { %v2169_v16 = vpop.f32.mrb[28].mxu0 }
 0xccf   : > { %v1729_v18 = vadd.f32 %v2169_v16, %v1983_v15  ;;  %v1720_v19 = vpop.f32.mrb[29].mxu0 }
 0xcd0   : > { %v1721_v20 = vadd.f32 %v1983_v15, %v1720_v19  ;;  %v2170_v22 = vpop.f32.mrb[30].mxu0 }
 0xcd1   : > { %v1723_v24 = vpop.f32.mrb[31].mxu0  ;;  %v1736_v2 = vmax.f32 %v1729_v18, 0.0 }
 0xcd2   : > { %v1724_v27 = vadd.f32 %v1983_v15, %v1723_v24  ;;  %v1734_v3 = vmax.f32 %v1721_v20, 0.0 }
 0xcd3   : > { %v1738_v4 = vpack.c.bf16 %v1736_v2, %v1736_v2 }
 0xcd4   : > { %v1735_v28 = vmax.f32 %v1724_v27, 0.0 }
 0xcd6   : > { %v1737_v29 = vpack.c.bf16 %v1735_v28, %v1734_v3 }
 0xcd8   : > { %2187 = vmatprep.mubr.bf16.mxu1 %v1737_v29 }
 0xcd9   : > { %2188 = vmatmul.mubr.bf16.vlgmr.msra.gmra.mrb[28].mxu1 %v1738_v4 }
 0xdac   : > { %v2189_v31 = vpop.f32.mrb[28].mxu1 }
 0xdad   : > { %v1853_v32 = vadd.f32 %v2189_v31, %v1990_v30  ;;  %v1844_v33 = vpop.f32.mrb[29].mxu1 }
 0xdae   : > { %v1845_v34 = vadd.f32 %v1990_v30, %v1844_v33  ;;  %v2190_v35 = vpop.f32.mrb[30].mxu1 }
 0xdaf   : > { %v1860_v36 = vadd.f32 %v1853_v32, %v2646_v26  ;;  %v1847_v37 = vpop.f32.mrb[31].mxu1 }
 0xdb0   : > { %v1858_v38 = vadd.f32 %v1845_v34, %v2639_v21  ;;  %v1848_v39 = vadd.f32 %v1990_v30, %v1847_v37 }
 0xdb1   : > { %v2006_v40 = vpack.c.bf16 %v1860_v36, %v1860_v36 }
 0xdb2   : > { %v2004_v41 = vpack.c.bf16 %v1858_v38, %v1858_v38  ;;  %v1859_v42 = vadd.f32 %v1848_v39, %v2642_v23 }
 0xdb3   : > { %1877 = vst.msk [vmem:[%s440_s17 + $0x8] sm:$0xf] %vm1874_vm5, %v2006_v40 }
 0xdb4   : > { %1875 = vst.msk [vmem:[%s440_s17] sm:$0xf] %vm1874_vm5, %v2004_v41  ;;  %v2005_v43 = vpack.c.bf16 %v1859_v42, %v1859_v42 }
 0xdb6   : > { %1876 = vst.msk [vmem:[%s440_s17 + $0x4] sm:$0xf] %vm1874_vm5, %v2005_v43 }
 0xdb7 PF: > { %s23_s25 = sadd.s32 1, %s2314_s25  }
 0xdb8   : > { %p20_p4 = scmp.ge.s32.totalorder %s23_s25, 4  }
 0xdba   :  { %22 = sbr.rel (!%p20_p4) target bundleno = 1 (0x1), region = 102 }

</bundles_post_ra>
